<compile_context>
chip_gen: v7x
topology: tpu7x:2x2x1
jax: 0.10.0
libtpu: 0.0.40
codegen_flags: <defaults>
</compile_context>

<pallas_src>
import functools

import jax
import jax.numpy as jnp
from jax import lax
from jax.experimental import pallas as pl
from jax.experimental.pallas import tpu as pltpu


_NEG_PAD = jnp.float32(-1e30)  # output-layer bias pad: exp(-1e30 - m) == 0 in f32


def _round_up(n, m):
    return -(-n // m) * m


def choose_batch_tile(batch):
    """Pick (tb, batch_pad). tb is a multiple of 8, <= 512.

    Prefers >=4 grid steps when tiles can stay >=128 rows (v7x megacore: 2 TCs
    x >=2-deep pipeline), else >=2 steps when the batch allows, else a single
    full-batch tile. batch_pad = steps * tb.
    """
    batch8 = _round_up(batch, 8)
    if batch8 >= 4 * 128:
        steps = max(4, pl.cdiv(batch8, 512))
    elif batch8 >= 16:
        steps = 2
    else:
        steps = 1
    tb = _round_up(pl.cdiv(batch8, steps), 8)
    return tb, steps * tb


def _mlp_kernel(n_hidden, *refs):
    """refs = (x_ref, w_0, b_0, ..., w_{n_hidden-1}, b_{n_hidden-1},
               w_out, b_out, out_ref)

    x_ref: (TB, in_pad) bf16 batch tile. Weights are (in_pad, out_pad) bf16 in
    canonical (K, N) layout; biases are (1, out_pad) f32. All matmuls / bias /
    ReLU / log-softmax happen in VMEM; accumulation and epilogue are f32.
    """
    x_ref = refs[0]
    out_ref = refs[-1]
    params = refs[1:-1]

    x = x_ref[...]  # bf16 (TB, in_pad); streamed in bf16, no in-kernel cast.

    def linear(h, w, b):
        # h: (TB, K) bf16, w: (K, N) bf16 -> (TB, N) f32 (MXU, f32 accum)
        y = jnp.dot(h, w, preferred_element_type=jnp.float32)
        return y + b

    for li in range(n_hidden):
        w = params[2 * li][...]
        b = params[2 * li + 1][...]
        x = jnp.maximum(linear(x, w, b), 0.0).astype(jnp.bfloat16)
        # nn.Dropout(p=drop_prob): module default p=0 -> identity.
        # TODO(synk): training-mode dropout (p > 0) via pltpu.prng_random_bits.

    w_o = params[2 * n_hidden][...]
    b_o = params[2 * n_hidden + 1][...]
    z = linear(x, w_o, b_o)                                  # (TB, out_pad) f32

    # log_softmax over dim=1. Padded logits carry bias -1e30: they never win
    # the row max, and exp underflows to exactly 0, so the normalizer is exact.
    m = jnp.max(z, axis=1, keepdims=True)
    shifted = z - m
    lse = jnp.log(jnp.sum(jnp.exp(shifted), axis=1, keepdims=True))
    out_ref[...] = (shifted - lse).astype(out_ref.dtype)


def init_network_params(key, input_length, output_length, hidden_layers):
    """PyTorch-style uniform(+-1/sqrt(fan_in)) init; torch (out, in) weights.

    Returns flat list [W0, b0, W1, b1, ..., W_out, b_out].
    """
    sizes = [input_length] + list(hidden_layers) + [output_length]
    params = []
    for fan_in, fan_out in zip(sizes[:-1], sizes[1:]):
        key, kw, kb = jax.random.split(key, 3)
        bound = 1.0 / jnp.sqrt(jnp.float32(fan_in))
        w = jax.random.uniform(kw, (fan_out, fan_in), jnp.float32, -bound, bound)
        b = jax.random.uniform(kb, (fan_out,), jnp.float32, -bound, bound)
        params.extend([w, b])
    return params


def prepare_params(params):
    """One-time (outside jit) packing of torch-layout params for the kernel:
       * weights transposed to canonical (K_pad, N_pad) layout, cast to bf16
         (no per-step in-kernel relayout; half the resident VMEM bytes)
       * all padded dims are multiples of 128 (lane-dense MXU, unmasked stores);
         layer-0 K is padded 784 -> 896 with zero columns
       * biases reshaped to (1, out_pad) f32; output-layer pad lanes get -1e30
         so log-softmax ignores them.
    Hidden-layer pads are zero, so padded activations are ReLU(0)=0 and the
    next layer's zero K-rows keep the math identical to the unpadded MLP.
    """
    n_layers = len(params) // 2
    prepared = []
    prev_pad = _round_up(params[0].shape[1], 128)   # layer-0 K pad (784 -> 896)
    for i in range(n_layers):
        w = params[2 * i]                  # (out, in) torch layout
        b = params[2 * i + 1]              # (out,)
        out_dim, in_dim = w.shape
        out_pad = _round_up(out_dim, 128)
        w_p = jnp.zeros((prev_pad, out_pad), jnp.float32)
        w_p = w_p.at[:in_dim, :out_dim].set(w.T)     # (K_pad, N_pad)
        fill = _NEG_PAD if i == n_layers - 1 else jnp.float32(0.0)
        b_p = jnp.full((1, out_pad), fill, jnp.float32)
        b_p = b_p.at[0, :out_dim].set(b)
        prepared.append(w_p.astype(jnp.bfloat16))
        prepared.append(b_p)
        prev_pad = out_pad
    return prepared


def prepare_input(x):
    """Pad x to (batch_pad, in_pad) bf16 for the kernel.

    Ideally the upstream producer already emits bf16 (and, for peak perf,
    already padded), making this a cheap pad / no-op; the cast here is only a
    fallback for f32 callers.
    """
    batch, in_dim = x.shape
    in_pad = _round_up(in_dim, 128)
    _, batch_pad = choose_batch_tile(batch)
    x = x.astype(jnp.bfloat16)
    return jnp.pad(x, ((0, batch_pad - batch), (0, in_pad - in_dim)))


@functools.partial(jax.jit, static_argnames=("n_hidden", "output_length", "batch"))
def network_forward(x, prepared, n_hidden, output_length, batch):
    """x: (batch_pad, in_pad) bf16 from prepare_input(); prepared: prepare_params()."""
    batch_pad, in_pad = x.shape
    out_pad = prepared[-1].shape[1]

    tb, expect_pad = choose_batch_tile(batch)
    assert batch_pad == expect_pad and batch_pad % tb == 0, (
        "x must be pre-padded with prepare_input()")

    grid = (batch_pad // tb,)
    in_specs = [pl.BlockSpec((tb, in_pad), lambda i: (i, 0))]
    for p in prepared:
        # Constant index_map -> weights/biases stay VMEM-resident across the grid.
        # Scaling note (v7x 64 MiB VMEM): for very wide layers add
        # pipeline_mode=pl.Buffered(1) here, raise vmem_limit_bytes, and/or
        # add a K/N grid axis.
        in_specs.append(pl.BlockSpec(p.shape, lambda i: (0, 0)))
    out_specs = pl.BlockSpec((tb, out_pad), lambda i: (i, 0))

    kernel = functools.partial(_mlp_kernel, n_hidden)
    out = pl.pallas_call(
        kernel,
        out_shape=jax.ShapeDtypeStruct((batch_pad, out_pad), jnp.float32),
        grid=grid,
        in_specs=in_specs,
        out_specs=out_specs,
        compiler_params=pltpu.CompilerParams(
            # Batch tiles are independent -> megacore-parallel on v7x
            # (choose_batch_tile keeps >=2 grid steps whenever batch allows).
            dimension_semantics=("parallel",),
        ),
    )(x, *prepared)
    return out[:batch, :output_length]


def reference_forward_f32(x, params, n_hidden):
    """Pure-JAX f32 reference matching the PyTorch forward (eval mode, p=0)."""
    h = x
    for li in range(n_hidden):
        w, b = params[2 * li], params[2 * li + 1]
        h = jnp.maximum(h @ w.T + b, 0.0)
    w_o, b_o = params[-2], params[-1]
    return jax.nn.log_softmax(h @ w_o.T + b_o, axis=1)


def reference_forward_bf16(x, params, n_hidden):
    """Pure-JAX reference using the same bf16-operand / f32-accum matmuls."""
    def linear(h, w, b):
        y = lax.dot_general(
            h.astype(jnp.bfloat16), w.astype(jnp.bfloat16),
            dimension_numbers=(((1,), (1,)), ((), ())),
            preferred_element_type=jnp.float32)
        return y + b

    h = x
    for li in range(n_hidden):
        h = jnp.maximum(linear(h, params[2 * li], params[2 * li + 1]), 0.0)
    z = linear(h, params[-2], params[-1])
    return jax.nn.log_softmax(z, axis=1)


if __name__ == "__main__":
    # Tile-scale but small shapes: batch=256 -> 2 grid steps of 128-row tiles
    # (real pipelining; megacore-shardable on v7x); K=784 padded to 896.
    batch = 256
    input_length = 784
    hidden_layers = [256, 128]
    output_length = 10
    n_hidden = len(hidden_layers)

    key = jax.random.PRNGKey(0)
    key, kx = jax.random.split(key)
    # Upstream producer emits bf16 activations; the kernel streams bf16 x.
    x = jax.random.normal(kx, (batch, input_length), jnp.float32).astype(jnp.bfloat16)

    params = init_network_params(key, input_length, output_length, hidden_layers)
    prepared = prepare_params(params)   # one-time packing, outside jit
    x_prep = prepare_input(x)           # pad K 784->896, batch->tile multiple

    out = network_forward(x_prep, prepared, n_hidden, output_length, batch)
    out = jax.block_until_ready(out)
    assert out.shape == (batch, output_length)

    # Exact-semantics check (same bf16 matmuls / f32 accumulation as kernel).
    ref_bf16 = reference_forward_bf16(x, params, n_hidden)
    assert jnp.allclose(out, ref_bf16, atol=2e-3, rtol=2e-3), "mismatch vs bf16 ref"

    # Sanity vs full-f32 PyTorch-equivalent math (loose tol for bf16 operands).
    ref_f32 = reference_forward_f32(x.astype(jnp.float32), params, n_hidden)
    assert jnp.allclose(out, ref_f32, atol=1e-1, rtol=1e-1), "mismatch vs f32 ref"

    # log_softmax sanity: rows sum to 1 in probability space.
    assert jnp.allclose(jnp.sum(jnp.exp(out), axis=1), 1.0, atol=1e-4)

    print("KERNEL_OK")
</pallas_src>

<mosaic_0001>
module attributes {stable_mosaic.version = 11 : i64} {
  func.func @_mlp_kernel(%arg0: i32, %arg1: memref<128x896xbf16, #tpu.memory_space<vmem>>, %arg2: memref<896x256xbf16, #tpu.memory_space<vmem>>, %arg3: memref<1x256xf32, #tpu.memory_space<vmem>>, %arg4: memref<256x128xbf16, #tpu.memory_space<vmem>>, %arg5: memref<1x128xf32, #tpu.memory_space<vmem>>, %arg6: memref<128x128xbf16, #tpu.memory_space<vmem>>, %arg7: memref<1x128xf32, #tpu.memory_space<vmem>>, %arg8: memref<128x128xf32, #tpu.memory_space<vmem>>) attributes {dimension_semantics = [#tpu.dimension_semantics<parallel>], iteration_bounds = array<i64: 2>, scalar_prefetch = 0 : i64, scratch_operands = 0 : i64, tpu.core_type = #tpu.core_type<tc>, window_params = [{transform_indices = @transform_0, window_bounds = array<i64: 128, 896>}, {pipeline_mode = #tpu.pipeline_mode<synchronous>, transform_indices = @transform_1, window_bounds = array<i64: 896, 256>}, {pipeline_mode = #tpu.pipeline_mode<synchronous>, transform_indices = @transform_2, window_bounds = array<i64: 1, 256>}, {pipeline_mode = #tpu.pipeline_mode<synchronous>, transform_indices = @transform_3, window_bounds = array<i64: 256, 128>}, {pipeline_mode = #tpu.pipeline_mode<synchronous>, transform_indices = @transform_4, window_bounds = array<i64: 1, 128>}, {pipeline_mode = #tpu.pipeline_mode<synchronous>, transform_indices = @transform_5, window_bounds = array<i64: 128, 128>}, {pipeline_mode = #tpu.pipeline_mode<synchronous>, transform_indices = @transform_6, window_bounds = array<i64: 1, 128>}, {transform_indices = @transform_7, window_bounds = array<i64: 128, 128>}]} {
    %c0 = arith.constant 0 : index
    %c0_0 = arith.constant 0 : index
    %0 = vector.load %arg1[%c0, %c0_0] : memref<128x896xbf16, #tpu.memory_space<vmem>>, vector<128x896xbf16>
    %c0_1 = arith.constant 0 : index
    %c0_2 = arith.constant 0 : index
    %1 = vector.load %arg2[%c0_1, %c0_2] : memref<896x256xbf16, #tpu.memory_space<vmem>>, vector<896x256xbf16>
    %c0_3 = arith.constant 0 : index
    %c0_4 = arith.constant 0 : index
    %2 = vector.load %arg3[%c0_3, %c0_4] : memref<1x256xf32, #tpu.memory_space<vmem>>, vector<1x256xf32>
    %cst = arith.constant dense<0.000000e+00> : vector<128x256xf32>
    %3 = tpu.matmul %0, %1, %cst {dimension_numbers = #tpu.dot_dimension_numbers<[1], [0], [0], [1], [0, 0, 1, 1], [], []>} : vector<128x896xbf16>, vector<896x256xbf16>, vector<128x256xf32> -> vector<128x256xf32>
    %4 = vector.broadcast %2 : vector<1x256xf32> to vector<128x256xf32>
    %5 = arith.addf %3, %4 : vector<128x256xf32>
    %cst_5 = arith.constant 0.000000e+00 : f32
    %6 = vector.broadcast %cst_5 : f32 to vector<128x256xf32>
    %7 = arith.maximumf %5, %6 : vector<128x256xf32>
    %8 = arith.truncf %7 : vector<128x256xf32> to vector<128x256xbf16>
    %c0_6 = arith.constant 0 : index
    %c0_7 = arith.constant 0 : index
    %9 = vector.load %arg4[%c0_6, %c0_7] : memref<256x128xbf16, #tpu.memory_space<vmem>>, vector<256x128xbf16>
    %c0_8 = arith.constant 0 : index
    %c0_9 = arith.constant 0 : index
    %10 = vector.load %arg5[%c0_8, %c0_9] : memref<1x128xf32, #tpu.memory_space<vmem>>, vector<1x128xf32>
    %cst_10 = arith.constant dense<0.000000e+00> : vector<128x128xf32>
    %11 = tpu.matmul %8, %9, %cst_10 {dimension_numbers = #tpu.dot_dimension_numbers<[1], [0], [0], [1], [0, 0, 1, 1], [], []>} : vector<128x256xbf16>, vector<256x128xbf16>, vector<128x128xf32> -> vector<128x128xf32>
    %12 = vector.broadcast %10 : vector<1x128xf32> to vector<128x128xf32>
    %13 = arith.addf %11, %12 : vector<128x128xf32>
    %cst_11 = arith.constant 0.000000e+00 : f32
    %14 = vector.broadcast %cst_11 : f32 to vector<128x128xf32>
    %15 = arith.maximumf %13, %14 : vector<128x128xf32>
    %16 = arith.truncf %15 : vector<128x128xf32> to vector<128x128xbf16>
    %c0_12 = arith.constant 0 : index
    %c0_13 = arith.constant 0 : index
    %17 = vector.load %arg6[%c0_12, %c0_13] : memref<128x128xbf16, #tpu.memory_space<vmem>>, vector<128x128xbf16>
    %c0_14 = arith.constant 0 : index
    %c0_15 = arith.constant 0 : index
    %18 = vector.load %arg7[%c0_14, %c0_15] : memref<1x128xf32, #tpu.memory_space<vmem>>, vector<1x128xf32>
    %cst_16 = arith.constant dense<0.000000e+00> : vector<128x128xf32>
    %19 = tpu.matmul %16, %17, %cst_16 {dimension_numbers = #tpu.dot_dimension_numbers<[1], [0], [0], [1], [0, 0, 1, 1], [], []>} : vector<128x128xbf16>, vector<128x128xbf16>, vector<128x128xf32> -> vector<128x128xf32>
    %20 = vector.broadcast %18 : vector<1x128xf32> to vector<128x128xf32>
    %21 = arith.addf %19, %20 : vector<128x128xf32>
    %cst_17 = arith.constant dense<0xFF800000> : vector<128xf32>
    %22 = vector.multi_reduction <maximumf>, %21, %cst_17 [1] : vector<128x128xf32> to vector<128xf32>
    %23 = vector.shape_cast %22 : vector<128xf32> to vector<128x1xf32>
    %24 = vector.broadcast %23 : vector<128x1xf32> to vector<128x128xf32>
    %25 = arith.subf %21, %24 : vector<128x128xf32>
    %26 = math.exp %25 : vector<128x128xf32>
    %cst_18 = arith.constant dense<0.000000e+00> : vector<128xf32>
    %27 = vector.multi_reduction <add>, %26, %cst_18 [1] : vector<128x128xf32> to vector<128xf32>
    %28 = vector.shape_cast %27 : vector<128xf32> to vector<128x1xf32>
    %29 = math.log %28 : vector<128x1xf32>
    %30 = vector.broadcast %29 : vector<128x1xf32> to vector<128x128xf32>
    %31 = arith.subf %25, %30 : vector<128x128xf32>
    %c0_19 = arith.constant 0 : index
    %c0_20 = arith.constant 0 : index
    %32 = vector.load %arg8[%c0_19, %c0_20] : memref<128x128xf32, #tpu.memory_space<vmem>>, vector<128x128xf32>
    tpu.vector_store %arg8[%c0_19, %c0_20], %31 {strides = array<i32>} : memref<128x128xf32, #tpu.memory_space<vmem>>, vector<128x128xf32>,
    return
  }
  func.func @transform_0(%arg0: i32) -> (i32, i32) {
    %c0_i32 = arith.constant 0 : i32
    %c0_i32_0 = arith.constant 0 : i32
    return %arg0, %c0_i32 : i32, i32
  }
  func.func @transform_1(%arg0: i32) -> (i32, i32) {
    %c0_i32 = arith.constant 0 : i32
    %c0_i32_0 = arith.constant 0 : i32
    %c0_i32_1 = arith.constant 0 : i32
    return %c0_i32, %c0_i32_0 : i32, i32
  }
  func.func @transform_2(%arg0: i32) -> (i32, i32) {
    %c0_i32 = arith.constant 0 : i32
    %c0_i32_0 = arith.constant 0 : i32
    %c0_i32_1 = arith.constant 0 : i32
    return %c0_i32, %c0_i32_0 : i32, i32
  }
  func.func @transform_3(%arg0: i32) -> (i32, i32) {
    %c0_i32 = arith.constant 0 : i32
    %c0_i32_0 = arith.constant 0 : i32
    %c0_i32_1 = arith.constant 0 : i32
    return %c0_i32, %c0_i32_0 : i32, i32
  }
  func.func @transform_4(%arg0: i32) -> (i32, i32) {
    %c0_i32 = arith.constant 0 : i32
    %c0_i32_0 = arith.constant 0 : i32
    %c0_i32_1 = arith.constant 0 : i32
    return %c0_i32, %c0_i32_0 : i32, i32
  }
  func.func @transform_5(%arg0: i32) -> (i32, i32) {
    %c0_i32 = arith.constant 0 : i32
    %c0_i32_0 = arith.constant 0 : i32
    %c0_i32_1 = arith.constant 0 : i32
    return %c0_i32, %c0_i32_0 : i32, i32
  }
  func.func @transform_6(%arg0: i32) -> (i32, i32) {
    %c0_i32 = arith.constant 0 : i32
    %c0_i32_0 = arith.constant 0 : i32
    %c0_i32_1 = arith.constant 0 : i32
    return %c0_i32, %c0_i32_0 : i32, i32
  }
  func.func @transform_7(%arg0: i32) -> (i32, i32) {
    %c0_i32 = arith.constant 0 : i32
    %c0_i32_0 = arith.constant 0 : i32
    return %arg0, %c0_i32 : i32, i32
  }
}

</mosaic_0001>

<bundles_post_ra>
// kernel: network_forward.1
= control target key start
LH: loop header
LB: loop body
LE: loop exit
PB: predicated region body
PF: predicated region fallthrough
CT: control target
= control target key end

     0   :  { %12 = vsyncpa [#allocation3], 0  ;;  %s4167_s0 = inlined_call_operand.hbm [shape: bf16[256,896], index: 0, kind: input, shape index: {}]   ;;  %s4168_s1 = inlined_call_operand.hbm [shape: bf16[896,256], index: 1, kind: input, shape index: {}]   ;;  %s4169_s2 = inlined_call_operand.vmem [shape: f32[1,256], index: 2, kind: input, shape index: {}]   ;;  %s4170_s3 = inlined_call_operand.hbm [shape: bf16[256,128], index: 3, kind: input, shape index: {}]   ;;  %s4171_s4 = inlined_call_operand.vmem [shape: f32[1,128], index: 4, kind: input, shape index: {}]   ;;  %s4172_s5 = inlined_call_operand.hbm [shape: bf16[128,128], index: 5, kind: input, shape index: {}]   ;;  %s4173_s6 = inlined_call_operand.vmem [shape: f32[1,128], index: 6, kind: input, shape index: {}]   ;;  %s4174_s7 = inlined_call_operand.vmem [shape: f32[256,128], index: 7, kind: output, shape index: {}]  }
   0x1   :  { %14 = vsyncpa [#allocation3 + $0x1], 0 }
   0x2   :  { %15 = vsyncpa [#allocation5], 0 }
   0x3   :  { %16 = vsyncpa [#allocation8], 0  ;;  %s3656_s24 = smov 0   ;;  %s3658_s25 = smov 0  }
   0x4   :  { %s3660_s26 = smov 0   ;;  %s3662_s27 = smov 0  }
   0x5 LB: > { %s4179_s28 = sadd.s32 4294967295, %s3603_s27   ;;  %p42_p0 = scmp.ne.s32.totalorder %s3595_s25, %s3591_s24  ;;  %s3603_s27 = sphi %s3662_s27, %s4193_s27   ;;  %s3599_s26 = sphi %s3660_s26, %s4192_s26   ;;  %s3595_s25 = sphi %s3658_s25, %s4191_s25   ;;  %s3591_s24 = sphi %s3656_s24, %s4190_s24  }
   0x6   : > { %p3678_p1 = scmp.eq.s32.totalorder %s4179_s28, 0  ;;  %p2581_p2 = scmp.ge.s32.totalorder %s3603_s27, 1 }
   0x7   : > { %p205_p3 = scmp.lt.s32.totalorder %s3603_s27, 3  ;;  %s3605_s9 = smov [#allocation4]  }
   0x8   : > { %s4180_s29 = scalar_select %p3678_p1, 1, 0 }
   0x9   : > { %p3686_p4 = por %p3678_p1, %p42_p0  ;;  %p3690_p5 = pnand %p2581_p2, %p205_p3 }
   0xa   : > { %s217_s10 = sshll.u32 %s3605_s9, 4  ;;  %s3606_s12 = smov [#allocation6]   ;;  %s218_s10 = int_to_ptr.vmem [resolvable:$true] %s217_s10 }
   0xb   : > { %s4181_s30 = scalar_select %p3686_p4, 1, 0 }
   0xc   : > { %s4182_s8 = scalar_select %p3690_p5, 1, 0 }
   0xd   : > { %p3048_p6 = pneg %p3690_p5  ;;  %s233_s13 = sshll.u32 %s3606_s12, 4  ;;  %s3702_s13 = int_to_ptr.vmem [resolvable:$true] %s233_s13 }
   0xe   : > { %s3447_s16 = scalar_lea.hbm %s4168_s1, 14336 }
   0xf   : > { %p3698_p7 = pnand %p3048_p6, %p3678_p1  ;;  %p3448_p8 = scmp.ne.s32.totalorder %s4168_s1, %s3447_s16 }
  0x10   : > { %p3454_p12 = scmp.lt.u32.totalorder %s3447_s16, %s4168_s1 }
  0x11   : > { %p3712_p9 = pneg %p3698_p7 }
  0x13   : > { %p3450_p10 = pnand %p3712_p9, %p3448_p8 }
  0x15   : > { %p3451_p11 = pneg %p3450_p10 }
  0x17   : > { %p3456_p13 = pnand %p3454_p12, %p3451_p11 }
  0x19   : > { %3459 = shalt.err (!%p3456_p13)
}
  0x1a   : > { %s3460_s22 = scalar_lea.vmem %s218_s10, 14336  ;;  %p3468_p6 = scmp.lt.s32.totalorder %s218_s10, %s218_s10 }
  0x1b   : > { %p3461_p0 = scmp.ne.s32.totalorder %s218_s10, %s3460_s22  ;;  %p3469_p1 = scmp.lt.s32.totalorder %s3460_s22, %s3460_s22 }
  0x1d   : > { %p3463_p2 = pnand %p3461_p0, %p3712_p9  ;;  %p3470_p4 = por %p3469_p1, %p3468_p6 }
  0x1f   : > { %p3464_p3 = pneg %p3463_p2 }
  0x21   : > { %p3471_p5 = pnand %p3470_p4, %p3464_p3 }
  0x23   : > { %3474 = shalt.err (!%p3471_p5)
}
  0x24   : > { %s3607_s23 = smov 128   ;;  %s3608_s24 = smov 8  }
  0x25   : > { %3051 = dma.hbm_to_vmem [thread:$0]  (!%p3698_p7), %s4168_s1, 14336, %s218_s10, [#allocation5], %s3607_s23, %s3607_s23, %s3608_s24  }
  0x26   : > { %s3475_s16 = scalar_lea.hbm %s4170_s3, 2048 }
  0x27   : > { %p3476_p8 = scmp.ne.s32.totalorder %s4170_s3, %s3475_s16  ;;  %p3482_p5 = scmp.lt.u32.totalorder %s3475_s16, %s4170_s3 }
  0x29   : > { %p3478_p1 = pnand %p3476_p8, %p3712_p9 }
  0x2b   : > { %p3479_p4 = pneg %p3478_p1 }
  0x2d   : > { %p3484_p10 = pnand %p3482_p5, %p3479_p4 }
  0x2f   : > { %3487 = shalt.err (!%p3484_p10)
}
  0x30   : > { %s3488_s10 = scalar_lea.vmem %s3702_s13, 2048  ;;  %p3496_p0 = scmp.lt.s32.totalorder %s3702_s13, %s3702_s13 }
  0x31   : > { %p3489_p11 = scmp.ne.s32.totalorder %s3702_s13, %s3488_s10  ;;  %p3497_p2 = scmp.lt.s32.totalorder %s3488_s10, %s3488_s10 }
  0x33   : > { %p3491_p12 = pnand %p3489_p11, %p3712_p9  ;;  %p3498_p3 = por %p3497_p2, %p3496_p0 }
  0x35   : > { %p3492_p13 = pneg %p3491_p12 }
  0x37   : > { %p3499_p6 = pnand %p3498_p3, %p3492_p13 }
  0x39   : > { %3502 = shalt.err (!%p3499_p6)
}
  0x3a   : > { %s3609_s22 = smov 64   ;;  %s3610_s23 = smov 4  }
  0x3b   : > { %3054 = dma.hbm_to_vmem [thread:$0]  (!%p3698_p7), %s4170_s3, 2048, %s3702_s13, [#allocation5], %s3609_s22, %s3609_s22, %s3610_s23  }
  0x3c   : > { %s3611_s12 = smov [#allocation7]   ;;  %s3752_s15 = sadd.s32 1, %s3603_s27  }
  0x3d   : > { %s249_s14 = sshll.u32 %s3611_s12, 4  ;;  %s3503_s18 = scalar_lea.hbm %s4172_s5, 1024  ;;  %s250_s14 = int_to_ptr.vmem [resolvable:$true] %s249_s14 }
  0x3e   : > { %p3504_p8 = scmp.ne.s32.totalorder %s4172_s5, %s3503_s18  ;;  %p3510_p5 = scmp.lt.u32.totalorder %s3503_s18, %s4172_s5 }
  0x40   : > { %p3506_p1 = pnand %p3504_p8, %p3712_p9 }
  0x42   : > { %p3507_p4 = pneg %p3506_p1 }
  0x44   : > { %p3512_p10 = pnand %p3510_p5, %p3507_p4 }
  0x46   : > { %3515 = shalt.err (!%p3512_p10)
}
  0x47   : > { %s3516_s13 = scalar_lea.vmem %s250_s14, 1024  ;;  %p3524_p0 = scmp.lt.s32.totalorder %s250_s14, %s250_s14 }
  0x48   : > { %p3517_p11 = scmp.ne.s32.totalorder %s250_s14, %s3516_s13  ;;  %p3525_p2 = scmp.lt.s32.totalorder %s3516_s13, %s3516_s13 }
  0x4a   : > { %p3519_p12 = pnand %p3517_p11, %p3712_p9  ;;  %p3526_p3 = por %p3525_p2, %p3524_p0 }
  0x4c   : > { %p3520_p13 = pneg %p3519_p12 }
  0x4e   : > { %p3527_p6 = pnand %p3526_p3, %p3520_p13 }
  0x50   : > { %3530 = shalt.err (!%p3527_p6)
}
  0x51   : > { %3057 = dma.hbm_to_vmem [thread:$0]  (!%p3698_p7), %s4172_s5, 1024, %s250_s14, [#allocation8], %s3609_s22, %s3609_s22, %s3610_s23  }
  0x52   : > { %s26_s28 = ssub.s32 %s3603_s27, %s3752_s15  ;;  %s29_s19 = sadd.s32 1, %s3599_s26 }
  0x53   : > { %p27_p9 = scmp.eq.s32.totalorder %s26_s28, 0  ;;  %p36_p8 = scmp.ne.s32.totalorder %s3599_s26, %s3595_s25 }
  0x54   : > { %p37_p1 = scmp.eq.s32.totalorder %s3603_s27, 0  ;;  %p3065_p4 = scmp.lt.s32.totalorder %s3603_s27, 2 }
  0x55   : > { %s3780_s11 = scalar_select %p27_p9, %s3599_s26, %s29_s19  }
  0x56   : > { %p38_p5 = por %p37_p1, %p36_p8  ;;  %s266_s12 = sand.u32 1, %s3599_s26  }
  0x57   : > { %s3031_s16 = smul.u32 448, %s266_s12  ;;  %s3795_s10 = scalar_lea.sflag [#allocation3], %s266_s12 }
  0x58   : > { %s3032_s17 = smul.u32 7168, %s3603_s27  ;;  %p3784_p10 = pnand %p3065_p4, %p38_p5 }
  0x59   : > { %s270_s23 = scalar_lea.vmem [#allocation2], %s3031_s16  ;;  %s3536_s28 = scalar_lea.hbm %s4167_s0, 14336 }
  0x5a   : > { %s3791_s22 = scalar_lea.hbm %s4167_s0, %s3032_s17  ;;  %s278_s14 = sshll.u32 %s270_s23, 4  ;;  %s3793_s14 = int_to_ptr.vmem [resolvable:$true] %s278_s14 }
  0x5b   : > { %s3531_s13 = scalar_lea.hbm %s3791_s22, 7168  ;;  %p3533_p11 = pneg %p3784_p10 }
  0x5c   : > { %p3532_p7 = scmp.ne.s32.totalorder %s3791_s22, %s3531_s13  ;;  %p3537_p0 = scmp.lt.u32.totalorder %s3791_s22, %s4167_s0 }
  0x5d   : > { %p3538_p2 = scmp.lt.u32.totalorder %s3536_s28, %s3531_s13  ;;  %p3540_p6 = scmp.lt.u32.totalorder %s3531_s13, %s3791_s22 }
  0x5e   : > { %p3534_p12 = pnand %p3533_p11, %p3532_p7 }
  0x5f   : > { %p3539_p3 = por %p3538_p2, %p3537_p0 }
  0x60   : > { %p3535_p13 = pneg %p3534_p12 }
  0x61   : > { %p3541_p9 = por %p3540_p6, %p3539_p3 }
  0x63   : > { %p3542_p8 = pnand %p3541_p9, %p3535_p13 }
  0x65   : > { %3545 = shalt.err (!%p3542_p8)
}
  0x66   : > { %s3546_s12 = scalar_lea.vmem %s3793_s14, 7168  ;;  %s3612_s16 = smov [#allocation2]  }
  0x67   : > { %p3547_p1 = scmp.ne.s32.totalorder %s3793_s14, %s3546_s12  ;;  %s3551_s20 = sshll.u32 %s3612_s16, 4  ;;  %s3552_s20 = int_to_ptr.vmem [resolvable:$false] %s3551_s20 }
  0x68   : > { %s3553_s21 = scalar_lea.vmem %s3552_s20, 14336  ;;  %p3554_p7 = scmp.lt.s32.totalorder %s3793_s14, %s3552_s20 }
  0x69   : > { %p3549_p4 = pnand %p3547_p1, %p3533_p11  ;;  %p3555_p12 = scmp.lt.s32.totalorder %s3553_s21, %s3546_s12 }
  0x6b   : > { %p3550_p5 = pneg %p3549_p4  ;;  %p3556_p0 = por %p3555_p12, %p3554_p7 }
  0x6d   : > { %p3557_p2 = pnand %p3556_p0, %p3550_p5 }
  0x6f   : > { %3560 = shalt.err (!%p3557_p2)
}
  0x70   : > { %s3613_s23 = smov 448   ;;  %s3614_s13 = smov 28  }
  0x71   : > { %3061 = dma.hbm_to_vmem [thread:$0]  (!%p3784_p10), %s3791_s22, 7168, %s3793_s14, %s3795_s10, %s3613_s23, %s3613_s23, %s3614_s13  }
  0x72   : > { %p4186_p11 = scmp.ne.s32.totalorder %s4182_s8, 0 }
  0x73   : > { %s292_s24 = sand.u32 (!%p4186_p11), 1, %s3595_s25   ;;  %p4187_p13 = scmp.ne.s32.totalorder (!%p4186_p11), %s4181_s30, 0 }
  0x74   : > { %290 = sbr.rel (%p4186_p11) target bundleno = 1359 (0x54f), region = 48  ;;  %s293_s28 = scalar_lea.sflag (!%p4186_p11), [#allocation3], %s292_s24 }
  0x75   : > { %s3033_s9 = smul.u32 (!%p4186_p11), 448, %s292_s24 }
  0x77   : > { %s3826_s19 = scalar_lea.vmem (!%p4186_p11), [#allocation2], %s3033_s9 }
  0x7b   : > { %3578 = dma.done.wait (%p4187_p13), %s293_s28, 7168  }
  0x7c   : > { %3580 = vsyncadd (%p4187_p13), %s293_s28, 4294960128  ;;  %p4188_p3 = scmp.ne.s32.totalorder %s4180_s29, 0 }
  0x7e   : > { %3582 = dma.done.wait (%p4188_p3), [#allocation5], 16384  }
  0x7f   : > { %3584 = vsyncadd (%p4188_p3), [#allocation5], 4294950912 }
  0x80   : > { %3586 = dma.done.wait (%p4188_p3), [#allocation8], 1024  }
  0x81   : > { %3588 = vsyncadd (%p4188_p3), [#allocation8], 4294966272  ;;  %v3111_v0 = vld [vmem:[#allocation4 + $0x104] ss:$8 sps:$4 sm:$0xff]   ;;  %v3113_v1 = vld [vmem:[#allocation4 + $0x100] ss:$8 sps:$4 sm:$0xff]  }
  0x82   : > { %1496 = vmatprep.subr.bf16.mxu0 %v3111_v0  ;;  %v3114_v2 = vld [vmem:[#allocation4 + $0x114] ss:$8 sps:$4 sm:$0xff]   ;;  %v3116_v3 = vld [vmem:[#allocation4 + $0x110] ss:$8 sps:$4 sm:$0xff]   ;;  %v3117_v4 = vld [vmem:[#allocation4 + $0x124] ss:$8 sps:$4 sm:$0xff]  }
  0x83   : > { %1497 = vmatpush1.bf16.msra.mxu0 %v3113_v1  ;;  %v3119_v5 = vld [vmem:[#allocation4 + $0x120] ss:$8 sps:$4 sm:$0xff]   ;;  %v3120_v6 = vld [vmem:[#allocation4 + $0x134] ss:$8 sps:$4 sm:$0xff]   ;;  %v3122_v7 = vld [vmem:[#allocation4 + $0x130] ss:$8 sps:$4 sm:$0xff]  }
  0x84   : > { %1498 = vmatprep.subr.bf16.mxu0 %v3114_v2  ;;  %v3123_v8 = vld [vmem:[#allocation4 + $0x144] ss:$8 sps:$4 sm:$0xff]   ;;  %v3125_v9 = vld [vmem:[#allocation4 + $0x140] ss:$8 sps:$4 sm:$0xff]   ;;  %v3126_v10 = vld [vmem:[#allocation4 + $0x154] ss:$8 sps:$4 sm:$0xff]  }
  0x85   : > { %v3128_v11 = vld [vmem:[#allocation4 + $0x150] ss:$8 sps:$4 sm:$0xff]   ;;  %v3129_v12 = vld [vmem:[#allocation4 + $0x164] ss:$8 sps:$4 sm:$0xff]   ;;  %v3131_v14 = vld [vmem:[#allocation4 + $0x160] ss:$8 sps:$4 sm:$0xff]  }
  0x86   : > { %v3161_v13 = vld [vmem:[%s3826_s19 + $0xc] ss:$28 sps:$4 sm:$0xff]   ;;  %v3132_v15 = vld [vmem:[#allocation4 + $0x174] ss:$8 sps:$4 sm:$0xff]   ;;  %v3134_v16 = vld [vmem:[#allocation4 + $0x170] ss:$8 sps:$4 sm:$0xff]  }
  0x87   : > { %1499 = vmatpush1.bf16.msra.mxu0 %v3116_v3  ;;  %1528 = vmatprep.mubr.bf16.mxu0 %v3161_v13  ;;  %v3135_v17 = vld [vmem:[#allocation4 + $0x184] ss:$8 sps:$4 sm:$0xff]   ;;  %v3137_v18 = vld [vmem:[#allocation4 + $0x180] ss:$8 sps:$4 sm:$0xff]   ;;  %v3138_v19 = vld [vmem:[#allocation4 + $0x194] ss:$8 sps:$4 sm:$0xff]  }
  0x88   : > { %1500 = vmatprep.subr.bf16.mxu0 %v3117_v4  ;;  %v3140_v20 = vld [vmem:[#allocation4 + $0x190] ss:$8 sps:$4 sm:$0xff]   ;;  %v3141_v21 = vld [vmem:[#allocation4 + $0x1a4] ss:$8 sps:$4 sm:$0xff]   ;;  %v3143_v22 = vld [vmem:[#allocation4 + $0x1a0] ss:$8 sps:$4 sm:$0xff]  }
  0x89   : > { %v3144_v23 = vld [vmem:[#allocation4 + $0x1b4] ss:$8 sps:$4 sm:$0xff]   ;;  %v3146_v24 = vld [vmem:[#allocation4 + $0x1b0] ss:$8 sps:$4 sm:$0xff]   ;;  %v3147_v25 = vld [vmem:[#allocation4 + $0x1c4] ss:$8 sps:$4 sm:$0xff]  }
  0x8a   : > { %v3149_v26 = vld [vmem:[#allocation4 + $0x1c0] ss:$8 sps:$4 sm:$0xff]   ;;  %v3150_v27 = vld [vmem:[#allocation4 + $0x1d4] ss:$8 sps:$4 sm:$0xff]   ;;  %v3152_v28 = vld [vmem:[#allocation4 + $0x1d0] ss:$8 sps:$4 sm:$0xff]  }
  0x8b   : > { %1501 = vmatpush1.bf16.msra.mxu0 %v3119_v5  ;;  %v3153_v29 = vld [vmem:[#allocation4 + $0x1e4] ss:$8 sps:$4 sm:$0xff]   ;;  %v3233_v31 = vld [vmem:[#allocation4] ss:$8 sps:$4 sm:$0xff]   ;;  %v3156_v33 = vld [vmem:[#allocation4 + $0x1f4] ss:$8 sps:$4 sm:$0xff]  }
  0x8c   : > { %1502 = vmatprep.subr.bf16.mxu0 %v3120_v6  ;;  %v3228_v30 = vld [vmem:[#allocation4 + $0x4] ss:$8 sps:$4 sm:$0xff]   ;;  %v3155_v32 = vld [vmem:[#allocation4 + $0x1e0] ss:$8 sps:$4 sm:$0xff]   ;;  %v3237_v34 = vld [vmem:[#allocation4 + $0x14] ss:$8 sps:$4 sm:$0xff]  }
  0x8d   : > { %1383 = vmatprep.subr.bf16.mxu1 %v3228_v30  ;;  %v3158_v35 = vld [vmem:[#allocation4 + $0x1f0] ss:$8 sps:$4 sm:$0xff]   ;;  %v3164_v37 = vld [vmem:[#allocation4 + $0x204] ss:$8 sps:$4 sm:$0xff]   ;;  %v3245_v39 = vld [vmem:[#allocation4 + $0x20] ss:$8 sps:$4 sm:$0xff]  }
  0x8e   : > { %1384 = vmatpush1.bf16.msra.mxu1 %v3233_v31  ;;  %v3242_v36 = vld [vmem:[#allocation4 + $0x10] ss:$8 sps:$4 sm:$0xff]   ;;  %v3243_v38 = vld [vmem:[#allocation4 + $0x24] ss:$8 sps:$4 sm:$0xff]   ;;  %v3248_v40 = vld [vmem:[#allocation4 + $0x34] ss:$8 sps:$4 sm:$0xff]  }
  0x8f   : > { %1503 = vmatpush1.bf16.msra.mxu0 %v3122_v7  ;;  %1385 = vmatprep.subr.bf16.mxu1 %v3237_v34  ;;  %v3159_v41 = vld [vmem:[%s3826_s19 + $0x8] ss:$28 sps:$4 sm:$0xff]   ;;  %v3167_v43 = vld [vmem:[#allocation4 + $0x214] ss:$8 sps:$4 sm:$0xff]   ;;  %v3254_v45 = vld [vmem:[#allocation4 + $0x30] ss:$8 sps:$4 sm:$0xff]  }
  0x90   : > { %1504 = vmatprep.subr.bf16.mxu0 %v3123_v8  ;;  %v3162_v42 = vld [vmem:[#allocation4 + $0x200] ss:$8 sps:$4 sm:$0xff]   ;;  %v3255_v46 = vld [vmem:[#allocation4 + $0x44] ss:$8 sps:$4 sm:$0xff]   ;;  %v3165_v47 = vld [vmem:[#allocation4 + $0x210] ss:$8 sps:$4 sm:$0xff]  }
  0x91   : > { %v3168_v44 = vld [vmem:[%s3826_s19 + $0x44] ss:$28 sps:$4 sm:$0xff]   ;;  %v3260_v50 = vld [vmem:[#allocation4 + $0x54] ss:$8 sps:$4 sm:$0xff]   ;;  %v3266_v55 = vld [vmem:[#allocation4 + $0x50] ss:$8 sps:$4 sm:$0xff]  }
  0x92   : > { %1386 = vmatpush1.bf16.msra.mxu1 %v3242_v36  ;;  %v3173_v48 = vld [vmem:[#allocation4 + $0x224] ss:$8 sps:$4 sm:$0xff]   ;;  %v3257_v49 = vld [vmem:[#allocation4 + $0x40] ss:$8 sps:$4 sm:$0xff]   ;;  %v3177_v53 = vld [vmem:[%s3826_s19 + $0x7c] ss:$28 sps:$4 sm:$0xff]  }
  0x93   : > { %1505 = vmatpush1.bf16.msra.mxu0 %v3125_v9  ;;  %1387 = vmatprep.subr.bf16.mxu1 %v3243_v38  ;;  %v3170_v51 = vld [vmem:[%s3826_s19 + $0x40] ss:$28 sps:$4 sm:$0xff]   ;;  %v3267_v56 = vld [vmem:[#allocation4 + $0x64] ss:$8 sps:$4 sm:$0xff]   ;;  %v3174_v57 = vld [vmem:[#allocation4 + $0x230] ss:$8 sps:$4 sm:$0xff]  }
  0x94   : > { %1506 = vmatprep.subr.bf16.mxu0 %v3126_v10  ;;  %v3171_v52 = vld [vmem:[#allocation4 + $0x220] ss:$8 sps:$4 sm:$0xff]   ;;  %v3176_v54 = vld [vmem:[#allocation4 + $0x234] ss:$8 sps:$4 sm:$0xff]   ;;  %v3182_v58 = vld [vmem:[#allocation4 + $0x244] ss:$8 sps:$4 sm:$0xff]  }
  0x95   : > { %v3269_v59 = vld [vmem:[#allocation4 + $0x60] ss:$8 sps:$4 sm:$0xff]   ;;  %v3272_v60 = vld [vmem:[#allocation4 + $0x74] ss:$8 sps:$4 sm:$0xff]   ;;  %v3278_v1 = vld [vmem:[#allocation4 + $0x70] ss:$8 sps:$4 sm:$0xff]  }
  0x96   : > { %1388 = vmatpush1.bf16.msra.mxu1 %v3245_v39  ;;  %v3179_v61 = vld [vmem:[%s3826_s19 + $0x78] ss:$28 sps:$4 sm:$0xff]   ;;  %v3180_v62 = vld [vmem:[#allocation4 + $0x240] ss:$8 sps:$4 sm:$0xff]   ;;  %v3279_v2 = vld [vmem:[#allocation4 + $0x84] ss:$8 sps:$4 sm:$0xff]  }
  0x97   : > { %1507 = vmatpush1.bf16.msra.mxu0 %v3128_v11  ;;  %1389 = vmatprep.subr.bf16.mxu1 %v3248_v40  ;;  %v3185_v63 = vld [vmem:[#allocation4 + $0x254] ss:$8 sps:$4 sm:$0xff]   ;;  %v3183_v3 = vld [vmem:[#allocation4 + $0x250] ss:$8 sps:$4 sm:$0xff]   ;;  %v3191_v4 = vld [vmem:[#allocation4 + $0x264] ss:$8 sps:$4 sm:$0xff]  }
  0x98   : > { %1508 = vmatprep.subr.bf16.mxu0 %v3129_v12  ;;  %v3186_v0 = vld [vmem:[%s3826_s19 + $0xb4] ss:$28 sps:$4 sm:$0xff]   ;;  %v3281_v5 = vld [vmem:[#allocation4 + $0x80] ss:$8 sps:$4 sm:$0xff]   ;;  %v3291_v12 = vld [vmem:[#allocation4 + $0xa4] ss:$8 sps:$4 sm:$0xff]  }
  0x99   : > { %v3284_v6 = vld [vmem:[#allocation4 + $0x94] ss:$8 sps:$4 sm:$0xff]   ;;  %v3188_v7 = vld [vmem:[%s3826_s19 + $0xb0] ss:$28 sps:$4 sm:$0xff]   ;;  %v3189_v8 = vld [vmem:[#allocation4 + $0x260] ss:$8 sps:$4 sm:$0xff]  }
  0x9a   : > { %1390 = vmatpush1.bf16.msra.mxu1 %v3254_v45  ;;  %v3195_v9 = vld [vmem:[%s3826_s19 + $0xec] ss:$28 sps:$4 sm:$0xff]   ;;  %v3194_v10 = vld [vmem:[#allocation4 + $0x274] ss:$8 sps:$4 sm:$0xff]   ;;  %v3290_v11 = vld [vmem:[#allocation4 + $0x90] ss:$8 sps:$4 sm:$0xff]  }
  0x9b   : > { %1509 = vmatpush1.bf16.msra.mxu0 %v3131_v14  ;;  %1391 = vmatprep.subr.bf16.mxu1 %v3255_v46  ;;  %v3192_v13 = vld [vmem:[#allocation4 + $0x270] ss:$8 sps:$4 sm:$0xff]   ;;  %v3200_v14 = vld [vmem:[#allocation4 + $0x284] ss:$8 sps:$4 sm:$0xff]   ;;  %v3212_v30 = vld [vmem:[#allocation4 + $0x2b4] ss:$8 sps:$4 sm:$0xff]  }
  0x9c   : > { %1510 = vmatprep.subr.bf16.mxu0 %v3132_v15  ;;  %v3197_v15 = vld [vmem:[%s3826_s19 + $0xe8] ss:$28 sps:$4 sm:$0xff]   ;;  %v3213_v31 = vld [vmem:[%s3826_s19 + $0x15c] ss:$28 sps:$4 sm:$0xff]   ;;  %s4189_s10 = sadd.s32 4294967295, %s3603_s27  }
  0x9d   : > { %v3210_v34 = vld [vmem:[#allocation4 + $0x2b0] ss:$8 sps:$4 sm:$0xff]   ;;  %v3218_v36 = vld [vmem:[#allocation4 + $0x2c4] ss:$8 sps:$4 sm:$0xff]   ;;  %v3216_v38 = vld [vmem:[#allocation4 + $0x2c0] ss:$8 sps:$4 sm:$0xff]  }
  0x9e   : > { %1392 = vmatpush1.bf16.msra.mxu1 %v3257_v49  ;;  %v3320_v39 = vld [vmem:[#allocation4 + $0xf4] ss:$8 sps:$4 sm:$0xff]   ;;  %s2593_s17 = sshll.u32 %s4189_s10, 4 }
  0x9f   : > { %1511 = vmatpush1.bf16.msra.mxu0 %v3134_v16  ;;  %1393 = vmatprep.subr.bf16.mxu1 %v3260_v50  ;;  %v3293_v16 = vld [vmem:[#allocation4 + $0xa0] ss:$8 sps:$4 sm:$0xff]   ;;  %v3221_v40 = vld [vmem:[#allocation4 + $0x2d4] ss:$8 sps:$4 sm:$0xff]   ;;  %p341_p10 = scmp.lt.s32.totalorder %s2593_s17, 31 }
  0xa0   : > { %1512 = vmatprep.subr.bf16.mxu0 %v3135_v17  ;;  %v3296_v17 = vld [vmem:[#allocation4 + $0xb4] ss:$8 sps:$4 sm:$0xff]  }
  0xa1   : > { %v3327_v45 = vld [vmem:[%s3826_s19] ss:$28 sps:$4 sm:$0xff]   ;;  %v3236_v49 = vld [vmem:[%s3826_s19 + $0x14] ss:$28 sps:$4 sm:$0xff]   ;;  %s4195_s17 = smov (!%p341_p10, %s2593_s17), 31 }
  0xa2   : > { %1394 = vmatpush1.bf16.msra.mxu1 %v3266_v55  ;;  %v3331_v46 = vld [vmem:[%s3826_s19 + $0x3c] ss:$28 sps:$4 sm:$0xff]   ;;  %s2594_s12 = sshll.u32 %s4195_s17, 3 }
  0xa3   : > { %1513 = vmatpush1.bf16.msra.mxu0 %v3137_v18  ;;  %1395 = vmatprep.subr.bf16.mxu1 %v3267_v56  ;;  %v3198_v18 = vld [vmem:[#allocation4 + $0x280] ss:$8 sps:$4 sm:$0xff]   ;;  %v3232_v50 = vld [vmem:[#allocation4 + $0x2f4] ss:$8 sps:$4 sm:$0xff]   ;;  %v3234_v56 = vld [vmem:[%s3826_s19 + $0x10] ss:$28 sps:$4 sm:$0xff]   ;;  %s4120_s21 = scalar_lea.vmem %s4174_s7, %s2594_s12 }
  0xa4   : > { %1514 = vmatprep.subr.bf16.mxu0 %v3138_v19  ;;  %v3203_v19 = vld [vmem:[#allocation4 + $0x294] ss:$8 sps:$4 sm:$0xff]  }
  0xa5   : > { %v3333_v55 = vld [vmem:[%s3826_s19 + $0x38] ss:$28 sps:$4 sm:$0xff]  }
  0xa6   : > { %1396 = vmatpush1.bf16.msra.mxu1 %v3269_v59  ;;  %v3239_v59 = vld [vmem:[#allocation4 + $0x300] ss:$8 sps:$4 sm:$0xff]  }
  0xa7   : > { %1515 = vmatpush1.bf16.msra.mxu0 %v3140_v20  ;;  %1397 = vmatprep.subr.bf16.mxu1 %v3272_v60  ;;  %v3204_v20 = vld [vmem:[%s3826_s19 + $0x124] ss:$28 sps:$4 sm:$0xff]   ;;  %v3246_v60 = vld [vmem:[%s3826_s19 + $0x4c] ss:$28 sps:$4 sm:$0xff]  }
  0xa8   : > { %1516 = vmatprep.subr.bf16.mxu0 %v3141_v21  ;;  %v3302_v21 = vld [vmem:[#allocation4 + $0xb0] ss:$8 sps:$4 sm:$0xff]  }
  0xaa   : > { %1398 = vmatpush1.bf16.msra.mxu1 %v3278_v1  ;;  %v3365_v1 = vld [vmem:[#allocation6 + $0x58] sm:$0xff]  }
  0xab   : > { %1517 = vmatpush1.bf16.msra.mxu0 %v3143_v22  ;;  %1399 = vmatprep.subr.bf16.mxu1 %v3279_v2  ;;  %v3303_v22 = vld [vmem:[#allocation4 + $0xc4] ss:$8 sps:$4 sm:$0xff]   ;;  %v3251_v2 = vld [vmem:[#allocation4 + $0x310] ss:$8 sps:$4 sm:$0xff]  }
  0xac   : > { %1518 = vmatprep.subr.bf16.mxu0 %v3144_v23  ;;  %v3329_v23 = vld [vmem:[%s3826_s19 + $0x4] ss:$28 sps:$4 sm:$0xff]  }
  0xad   : > { %1415 = vmatprep.mubr.bf16.mxu1 %v3329_v23  ;;  %v3301_v23 = vld [vmem:[#allocation4 + $0x354] ss:$8 sps:$4 sm:$0xff]  }
  0xae   : > { %1400 = vmatpush1.bf16.msra.mxu1 %v3281_v5  ;;  %v3339_v5 = vld [vmem:[%s3826_s19 + $0xac] ss:$28 sps:$4 sm:$0xff]  }
  0xaf   : > { %1519 = vmatpush1.bf16.msra.mxu0 %v3146_v24  ;;  %1401 = vmatprep.subr.bf16.mxu1 %v3284_v6  ;;  %v3201_v24 = vld [vmem:[#allocation4 + $0x290] ss:$8 sps:$4 sm:$0xff]  }
  0xb0   : > { %1520 = vmatprep.subr.bf16.mxu0 %v3147_v25  ;;  %v3209_v25 = vld [vmem:[#allocation4 + $0x2a4] ss:$8 sps:$4 sm:$0xff]   ;;  %v3366_v6 = vld [vmem:[#allocation6 + $0x18] sm:$0xff]  }
  0xb2   : > { %1402 = vmatpush1.bf16.msra.mxu1 %v3290_v11  ;;  %v3277_v11 = vld [vmem:[#allocation4 + $0x334] ss:$8 sps:$4 sm:$0xff]  }
  0xb3   : > { %1521 = vmatpush1.bf16.msra.mxu0 %v3149_v26  ;;  %1403 = vmatprep.subr.bf16.mxu1 %v3291_v12  ;;  %v3206_v26 = vld [vmem:[%s3826_s19 + $0x120] ss:$28 sps:$4 sm:$0xff]  }
  0xb4   : > { %1522 = vmatprep.subr.bf16.mxu0 %v3150_v27  ;;  %v3305_v27 = vld [vmem:[#allocation4 + $0xc0] ss:$8 sps:$4 sm:$0xff]  }
  0xb5   : > { %v3368_v12 = vld [vmem:[#allocation6 + $0x20] sm:$0xff]  }
  0xb6   : > { %1404 = vmatpush1.bf16.msra.mxu1 %v3293_v16  ;;  %v3289_v16 = vld [vmem:[#allocation4 + $0x344] ss:$8 sps:$4 sm:$0xff]  }
  0xb7   : > { %1523 = vmatpush1.bf16.msra.mxu0 %v3152_v28  ;;  %1405 = vmatprep.subr.bf16.mxu1 %v3296_v17  ;;  %v3207_v28 = vld [vmem:[#allocation4 + $0x2a0] ss:$8 sps:$4 sm:$0xff]  }
  0xb8   : > { %1524 = vmatprep.subr.bf16.mxu0 %v3153_v29  ;;  %v3308_v29 = vld [vmem:[#allocation4 + $0xd4] ss:$8 sps:$4 sm:$0xff]   ;;  %v3343_v17 = vld [vmem:[%s3826_s19 + $0xe4] ss:$28 sps:$4 sm:$0xff]  }
  0xba   : > { %1406 = vmatpush1.bf16.msra.mxu1 %v3302_v21  ;;  %v3270_v21 = vld [vmem:[%s3826_s19 + $0xbc] ss:$28 sps:$4 sm:$0xff]  }
  0xbb   : > { %1525 = vmatpush1.bf16.msra.mxu0 %v3155_v32  ;;  %1407 = vmatprep.subr.bf16.mxu1 %v3303_v22  ;;  %v3314_v32 = vld [vmem:[#allocation4 + $0xd0] ss:$8 sps:$4 sm:$0xff]   ;;  %v3287_v22 = vld [vmem:[#allocation4 + $0x340] ss:$8 sps:$4 sm:$0xff]  }
  0xbc   : > { %1526 = vmatprep.subr.bf16.mxu0 %v3156_v33  ;;  %v3315_v33 = vld [vmem:[#allocation4 + $0xe4] ss:$8 sps:$4 sm:$0xff]  }
  0xbe   : > { %1408 = vmatpush1.bf16.msra.mxu1 %v3305_v27  ;;  %v3347_v27 = vld [vmem:[%s3826_s19 + $0x11c] ss:$28 sps:$4 sm:$0xff]  }
  0xbf   : > { %1527 = vmatpush1.bf16.msra.mxu0 %v3158_v35  ;;  %1409 = vmatprep.subr.bf16.mxu1 %v3308_v29  ;;  %v3215_v35 = vld [vmem:[%s3826_s19 + $0x158] ss:$28 sps:$4 sm:$0xff]  }
  0xc0   : > { %1609 = vmatprep.subr.bf16.mxu0 %v3164_v37  ;;  %v3317_v37 = vld [vmem:[#allocation4 + $0xe0] ss:$8 sps:$4 sm:$0xff]   ;;  %v3282_v29 = vld [vmem:[%s3826_s19 + $0xf4] ss:$28 sps:$4 sm:$0xff]  }
  0xc2   : > { %1529 = vmatmul.mubr.bf16.vlgmr.msra.gmra.mrb[0].mxu0 %v3159_v41  ;;  %1410 = vmatpush1.bf16.msra.mxu1 %v3314_v32  ;;  %v3222_v41 = vld [vmem:[%s3826_s19 + $0x194] ss:$28 sps:$4 sm:$0xff]  }
  0xc3   : > { %1610 = vmatpush1.bf16.msra.mxu0 %v3162_v42  ;;  %1538 = vmatprep.mubr.bf16.mxu0 %v3168_v44  ;;  %v3326_v42 = vld [vmem:[#allocation4 + $0xf0] ss:$8 sps:$4 sm:$0xff]   ;;  %v3227_v44 = vld [vmem:[#allocation4 + $0x2e4] ss:$8 sps:$4 sm:$0xff]  }
  0xc4   : > { %1611 = vmatprep.subr.bf16.mxu0 %v3167_v43  ;;  %1411 = vmatprep.subr.bf16.mxu1 %v3315_v33  ;;  %v3219_v43 = vld [vmem:[#allocation4 + $0x2d0] ss:$8 sps:$4 sm:$0xff]  }
  0xc5   : > { %v3323_v32 = vld [vmem:[#allocation4 + $0x370] ss:$8 sps:$4 sm:$0xff]  }
  0xc6   : > { %1412 = vmatpush1.bf16.msra.mxu1 %v3317_v37  ;;  %v3349_v33 = vld [vmem:[%s3826_s19 + $0x118] ss:$28 sps:$4 sm:$0xff]   ;;  %v3353_v37 = vld [vmem:[%s3826_s19 + $0x150] ss:$28 sps:$4 sm:$0xff]  }
  0xc7   : > { %1612 = vmatpush1.bf16.msra.mxu0 %v3165_v47  ;;  %1413 = vmatprep.subr.bf16.mxu1 %v3320_v39  ;;  %v3224_v47 = vld [vmem:[%s3826_s19 + $0x190] ss:$28 sps:$4 sm:$0xff]   ;;  %v3298_v39 = vld [vmem:[%s3826_s19 + $0x128] ss:$28 sps:$4 sm:$0xff]  }
  0xc8   : > { %1613 = vmatprep.subr.bf16.mxu0 %v3173_v48  ;;  %v3225_v48 = vld [vmem:[#allocation4 + $0x2e0] ss:$8 sps:$4 sm:$0xff]  }
  0xca   : > { %1539 = vmatmul.mubr.bf16.gmra.mrb[4].mxu0 %v3170_v51  ;;  %1414 = vmatpush1.bf16.msra.mxu1 %v3326_v42  ;;  %v3359_v51 = vld [vmem:[#allocation6 + $0x40] sm:$0xff]  }
  0xcb   : > { %1614 = vmatpush1.bf16.msra.mxu0 %v3171_v52  ;;  %1548 = vmatprep.mubr.bf16.mxu0 %v3177_v53  ;;  %v3360_v52 = vld [vmem:[#allocation6] sm:$0xff]   ;;  %v3361_v53 = vld [vmem:[#allocation6 + $0x48] sm:$0xff]  }
  0xcc   : > { %1615 = vmatprep.subr.bf16.mxu0 %v3176_v54  ;;  %v3230_v54 = vld [vmem:[#allocation4 + $0x2f0] ss:$8 sps:$4 sm:$0xff]   ;;  %2791 = vmatprep.subr.bf16.mxu1 %v3359_v51  ;;  %v3310_v42 = vld [vmem:[%s3826_s19 + $0x160] ss:$28 sps:$4 sm:$0xff]  }
  0xcd   : > { %1416 = vmatmul.mubr.bf16.vlgmr.msra.gmra.mrb[0].mxu1 %v3327_v45  ;;  %v3615_v45 = vmov 0   ;;  %v3346_v51 = vld [vmem:[%s3826_s19 + $0xf8] ss:$28 sps:$4 sm:$0xff]  }
  0xce   : > { %1425 = vmatprep.mubr.bf16.mxu1 %v3331_v46  ;;  %2792 = vmatpush3.bf16.msra.mxu1 %v3360_v52  ;;  %v3330_v46 = vld [vmem:[%s3826_s19 + $0x18] ss:$28 sps:$4 sm:$0xff]   ;;  %v3350_v52 = vld [vmem:[%s3826_s19 + $0x130] ss:$28 sps:$4 sm:$0xff]  }
  0xcf   : > { %1616 = vmatpush1.bf16.msra.mxu0 %v3174_v57  ;;  %v3241_v57 = vld [vmem:[#allocation4 + $0x304] ss:$8 sps:$4 sm:$0xff]   ;;  %2793 = vmatprep.subr.bf16.mxu1 %v3361_v53 }
  0xd0   : > { %1617 = vmatprep.subr.bf16.mxu0 %v3182_v58  ;;  %v3335_v58 = vld [vmem:[%s3826_s19 + $0x74] ss:$28 sps:$4 sm:$0xff]   ;;  %v3354_v53 = vld [vmem:[%s3826_s19 + $0x168] ss:$28 sps:$4 sm:$0xff]  }
  0xd2   : > { %1549 = vmatmul.mubr.bf16.gmra.mrb[8].mxu0 %v3179_v61  ;;  %v3362_v61 = vld [vmem:[#allocation6 + $0x8] sm:$0xff]  }
  0xd3   : > { %1618 = vmatpush1.bf16.msra.mxu0 %v3180_v62  ;;  %1558 = vmatprep.mubr.bf16.mxu0 %v3186_v0  ;;  %v3363_v62 = vld [vmem:[#allocation6 + $0x50] sm:$0xff]  }
  0xd4   : > { %1619 = vmatprep.subr.bf16.mxu0 %v3185_v63  ;;  %v3253_v63 = vld [vmem:[#allocation4 + $0x314] ss:$8 sps:$4 sm:$0xff]   ;;  %2794 = vmatpush3.bf16.msra.mxu1 %v3362_v61 }
  0xd5   : > { %1426 = vmatmul.mubr.bf16.gmra.mrb[4].mxu1 %v3333_v55  ;;  %v3364_v0 = vld [vmem:[#allocation6 + $0x10] sm:$0xff]   ;;  %2795 = vmatprep.subr.bf16.mxu1 %v3363_v62  ;;  %v3373_v55 = vld [vmem:[#allocation6 + $0x78] sm:$0xff]  }
  0xd6   : > { %1435 = vmatprep.mubr.bf16.mxu1 %v3335_v58 }
  0xd7   : > { %1620 = vmatpush1.bf16.msra.mxu0 %v3183_v3  ;;  %v3337_v3 = vld [vmem:[%s3826_s19 + $0x70] ss:$28 sps:$4 sm:$0xff]  }
  0xd8   : > { %1621 = vmatprep.subr.bf16.mxu0 %v3191_v4  ;;  %v3265_v4 = vld [vmem:[#allocation4 + $0x324] ss:$8 sps:$4 sm:$0xff]   ;;  %2796 = vmatpush3.bf16.msra.mxu1 %v3364_v0 }
  0xd9   : > { %2797 = vmatprep.subr.bf16.mxu1 %v3365_v1  ;;  %v3896_v1 = vld [vmem:[#allocation7] sm:$0xff]  }
  0xda   : > { %1559 = vmatmul.mubr.bf16.gmra.mrb[12].mxu0 %v3188_v7  ;;  %v3250_v7 = vld [vmem:[%s3826_s19 + $0x48] ss:$28 sps:$4 sm:$0xff]  }
  0xdb   : > { %1622 = vmatpush1.bf16.msra.mxu0 %v3189_v8  ;;  %1568 = vmatprep.mubr.bf16.mxu0 %v3195_v9  ;;  %v3367_v8 = vld [vmem:[#allocation6 + $0x60] sm:$0xff]  }
  0xdc   : > { %1623 = vmatprep.subr.bf16.mxu0 %v3194_v10  ;;  %v3258_v9 = vld [vmem:[%s3826_s19 + $0x84] ss:$28 sps:$4 sm:$0xff]   ;;  %2798 = vmatpush3.bf16.msra.mxu1 %v3366_v6 }
  0xdd   : > { %v3263_v10 = vld [vmem:[#allocation4 + $0x320] ss:$8 sps:$4 sm:$0xff]   ;;  %1436 = vmatmul.mubr.bf16.gmra.mrb[8].mxu1 %v3337_v3  ;;  %2799 = vmatprep.subr.bf16.mxu1 %v3367_v8 }
  0xde   : > { %1445 = vmatprep.mubr.bf16.mxu1 %v3339_v5 }
  0xdf   : > { %1624 = vmatpush1.bf16.msra.mxu0 %v3192_v13  ;;  %v3369_v13 = vld [vmem:[#allocation6 + $0x68] sm:$0xff]  }
  0xe0   : > { %1625 = vmatprep.subr.bf16.mxu0 %v3200_v14  ;;  %v3275_v14 = vld [vmem:[#allocation4 + $0x330] ss:$8 sps:$4 sm:$0xff]   ;;  %2800 = vmatpush3.bf16.msra.mxu1 %v3368_v12 }
  0xe1   : > { %2801 = vmatprep.subr.bf16.mxu1 %v3369_v13 }
  0xe2   : > { %1569 = vmatmul.mubr.bf16.gmra.mrb[16].mxu0 %v3197_v15  ;;  %v3341_v15 = vld [vmem:[%s3826_s19 + $0xa8] ss:$28 sps:$4 sm:$0xff]  }
  0xe3   : > { %1626 = vmatpush1.bf16.msra.mxu0 %v3198_v18  ;;  %1578 = vmatprep.mubr.bf16.mxu0 %v3204_v20  ;;  %v3370_v18 = vld [vmem:[#allocation6 + $0x28] sm:$0xff]   ;;  %v3371_v20 = vld [vmem:[#allocation6 + $0x70] sm:$0xff]  }
  0xe4   : > { %1627 = vmatprep.subr.bf16.mxu0 %v3203_v19  ;;  %v3262_v19 = vld [vmem:[%s3826_s19 + $0x80] ss:$28 sps:$4 sm:$0xff]   ;;  %2802 = vmatpush3.bf16.msra.mxu1 %v3370_v18 }
  0xe5   : > { %1446 = vmatmul.mubr.bf16.gmra.mrb[12].mxu1 %v3341_v15  ;;  %2803 = vmatprep.subr.bf16.mxu1 %v3371_v20 }
  0xe6   : > { %1455 = vmatprep.mubr.bf16.mxu1 %v3343_v17 }
  0xe7   : > { %1628 = vmatpush1.bf16.msra.mxu0 %v3201_v24  ;;  %v3299_v24 = vld [vmem:[#allocation4 + $0x350] ss:$8 sps:$4 sm:$0xff]  }
  0xe8   : > { %1629 = vmatprep.subr.bf16.mxu0 %v3209_v25  ;;  %v3345_v25 = vld [vmem:[%s3826_s19 + $0xe0] ss:$28 sps:$4 sm:$0xff]  }
  0xea   : > { %1579 = vmatmul.mubr.bf16.gmra.mrb[20].mxu0 %v3206_v26  ;;  %v3313_v26 = vld [vmem:[#allocation4 + $0x364] ss:$8 sps:$4 sm:$0xff]  }
  0xeb   : > { %1630 = vmatpush1.bf16.msra.mxu0 %v3207_v28  ;;  %1588 = vmatprep.mubr.bf16.mxu0 %v3213_v31  ;;  %v3274_v28 = vld [vmem:[%s3826_s19 + $0xb8] ss:$28 sps:$4 sm:$0xff]  }
  0xec   : > { %1631 = vmatprep.subr.bf16.mxu0 %v3212_v30  ;;  %v3311_v30 = vld [vmem:[#allocation4 + $0x360] ss:$8 sps:$4 sm:$0xff]   ;;  %v3325_v31 = vld [vmem:[#allocation4 + $0x374] ss:$8 sps:$4 sm:$0xff]  }
  0xed   : > { %1456 = vmatmul.mubr.bf16.gmra.mrb[16].mxu1 %v3345_v25 }
  0xee   : > { %1465 = vmatprep.mubr.bf16.mxu1 %v3347_v27 }
  0xef   : > { %1632 = vmatpush1.bf16.msra.mxu0 %v3210_v34  ;;  %v3351_v34 = vld [vmem:[%s3826_s19 + $0x154] ss:$28 sps:$4 sm:$0xff]  }
  0xf0   : > { %1633 = vmatprep.subr.bf16.mxu0 %v3218_v36  ;;  %v3294_v36 = vld [vmem:[%s3826_s19 + $0x12c] ss:$28 sps:$4 sm:$0xff]  }
  0xf2   : > { %1589 = vmatmul.mubr.bf16.gmra.mrb[24].mxu0 %v3215_v35  ;;  %v3286_v35 = vld [vmem:[%s3826_s19 + $0xf0] ss:$28 sps:$4 sm:$0xff]  }
  0xf3   : > { %1634 = vmatpush1.bf16.msra.mxu0 %v3216_v38  ;;  %1598 = vmatprep.mubr.bf16.mxu0 %v3222_v41  ;;  %v3355_v38 = vld [vmem:[%s3826_s19 + $0x18c] ss:$28 sps:$4 sm:$0xff]  }
  0xf4   : > { %1635 = vmatprep.subr.bf16.mxu0 %v3221_v40  ;;  %v3306_v40 = vld [vmem:[%s3826_s19 + $0x164] ss:$28 sps:$4 sm:$0xff]  }
  0xf5   : > { %1466 = vmatmul.mubr.bf16.gmra.mrb[20].mxu1 %v3349_v33  ;;  %v3357_v41 = vld [vmem:[%s3826_s19 + $0x188] ss:$28 sps:$4 sm:$0xff]  }
  0xf6   : > { %1475 = vmatprep.mubr.bf16.mxu1 %v3351_v34 }
  0xf7   : > { %1636 = vmatpush1.bf16.msra.mxu0 %v3219_v43  ;;  %v3318_v43 = vld [vmem:[%s3826_s19 + $0x19c] ss:$28 sps:$4 sm:$0xff]  }
  0xf8   : > { %1637 = vmatprep.subr.bf16.mxu0 %v3227_v44  ;;  %v3322_v44 = vld [vmem:[%s3826_s19 + $0x198] ss:$28 sps:$4 sm:$0xff]  }
  0xfa   : > { %1599 = vmatmul.mubr.bf16.gmra.mrb[28].mxu0 %v3224_v47  ;;  %v3334_v47 = vld [vmem:[%s3826_s19 + $0x50] ss:$28 sps:$4 sm:$0xff]  }
  0xfb   : > { %1638 = vmatpush1.bf16.msra.mxu0 %v3225_v48  ;;  %1641 = vmatprep.mubr.bf16.mxu0 %v3236_v49  ;;  %v3372_v48 = vld [vmem:[#allocation6 + $0x30] sm:$0xff]   ;;  %v3338_v49 = vld [vmem:[%s3826_s19 + $0x88] ss:$28 sps:$4 sm:$0xff]  }
  0xfc   : > { %1639 = vmatprep.subr.bf16.mxu0 %v3232_v50  ;;  %2804 = vmatpush3.bf16.msra.mxu1 %v3372_v48  ;;  %v3342_v50 = vld [vmem:[%s3826_s19 + $0xc0] ss:$28 sps:$4 sm:$0xff]  }
  0xfd   : > { %1476 = vmatmul.mubr.bf16.gmra.mrb[24].mxu1 %v3353_v37  ;;  %2805 = vmatprep.subr.bf16.mxu1 %v3373_v55 }
  0xfe   : > { %1485 = vmatprep.mubr.bf16.mxu1 %v3355_v38 }
  0xff   : > { %1640 = vmatpush1.bf16.msra.mxu0 %v3230_v54  ;;  %v3358_v54 = vld [vmem:[%s3826_s19 + $0x1a0] ss:$28 sps:$4 sm:$0xff]  }
 0x100   : > { %1722 = vmatprep.subr.bf16.mxu0 %v3241_v57 }
 0x102   : > { %1642 = vmatmul.mubr.bf16.vlgmr.msra.gmra.mrb[0].mxu0 %v3234_v56  ;;  %v3374_v56 = vld [vmem:[#allocation6 + $0x38] sm:$0xff]  }
 0x103   : > { %1723 = vmatpush1.bf16.msra.mxu0 %v3239_v59  ;;  %1651 = vmatprep.mubr.bf16.mxu0 %v3246_v60 }
 0x104   : > { %1724 = vmatprep.subr.bf16.mxu0 %v3253_v63  ;;  %2806 = vmatpush3.bf16.msra.mxu1 %v3374_v56 }
 0x105   : > { %1486 = vmatmul.mubr.bf16.gmra.mrb[28].mxu1 %v3357_v41  ;;  %2871 = vmatprep.subr.bf16.mxu1 %v3896_v1 }
 0x107   : > { %1725 = vmatpush1.bf16.msra.mxu0 %v3251_v2 }
 0x108   : > { %1726 = vmatprep.subr.bf16.mxu0 %v3265_v4 }
 0x10a   : > { %1652 = vmatmul.mubr.bf16.gmra.mrb[4].mxu0 %v3250_v7 }
 0x10b   : > { %1661 = vmatprep.mubr.bf16.mxu0 %v3258_v9  ;;  %1727 = vmatpush1.bf16.msra.mxu0 %v3263_v10 }
 0x10c   : > { %1728 = vmatprep.subr.bf16.mxu0 %v3277_v11 }
 0x10f   : > { %1729 = vmatpush1.bf16.msra.mxu0 %v3275_v14 }
 0x110   : > { %1730 = vmatprep.subr.bf16.mxu0 %v3289_v16 }
 0x112   : > { %1662 = vmatmul.mubr.bf16.gmra.mrb[8].mxu0 %v3262_v19 }
 0x113   : > { %1671 = vmatprep.mubr.bf16.mxu0 %v3270_v21  ;;  %1731 = vmatpush1.bf16.msra.mxu0 %v3287_v22  ;;  %v525_v22 = vlaneseq }
 0x114   : > { %1732 = vmatprep.subr.bf16.mxu0 %v3301_v23 }
 0x115   : > { %v526_v27 = vshrl.u32 %v525_v22, 7 }
 0x117   : > { %1733 = vmatpush1.bf16.msra.mxu0 %v3299_v24 }
 0x118   : > { %1734 = vmatprep.subr.bf16.mxu0 %v3313_v26 }
 0x11a   : > { %1672 = vmatmul.mubr.bf16.gmra.mrb[12].mxu0 %v3274_v28  ;;  %v527_v28 = vsub.s32 0, %v526_v27 }
 0x11b   : > { %1681 = vmatprep.mubr.bf16.mxu0 %v3282_v29  ;;  %1735 = vmatpush1.bf16.msra.mxu0 %v3311_v30  ;;  %v523_v29 = vld [vmem:[%s4169_s2] sm:$0x3]  ;;  %v531_v30 = vsub.s32 1, %v526_v27 }
 0x11c   : > { %1736 = vmatprep.subr.bf16.mxu0 %v3325_v31  ;;  %v3950_v31 = vrot.slane %v523_v29, %v527_v28 }
 0x11f   : > { %1737 = vmatpush1.bf16.msra.mxu0 %v3323_v32  ;;  %v3952_v32 = vrot.slane %v523_v29, %v531_v30 }
 0x122   : > { %1682 = vmatmul.mubr.bf16.gmra.mrb[16].mxu0 %v3286_v35 }
 0x123   : > { %1691 = vmatprep.mubr.bf16.mxu0 %v3294_v36 }
 0x12a   : > { %1692 = vmatmul.mubr.bf16.gmra.mrb[20].mxu0 %v3298_v39 }
 0x12b   : > { %1701 = vmatprep.mubr.bf16.mxu0 %v3306_v40 }
 0x132   : > { %1702 = vmatmul.mubr.bf16.gmra.mrb[24].mxu0 %v3310_v42 }
 0x133   : > { %1711 = vmatprep.mubr.bf16.mxu0 %v3318_v43 }
 0x13a   : > { %1712 = vmatmul.mubr.bf16.gmra.mrb[28].mxu0 %v3322_v44 }
 0x13b   : > { %1754 = vmatprep.mubr.bf16.mxu0 %v3615_v45 }
 0x142   : > { %1755 = vmatmul.mubr.bf16.vlgmr.msra.gmra.mrb[0].mxu0 %v3330_v46 }
 0x143   : > { %1764 = vmatprep.mubr.bf16.mxu0 %v3615_v45 }
 0x14a   : > { %1765 = vmatmul.mubr.bf16.gmra.mrb[4].mxu0 %v3334_v47 }
 0x14b   : > { %1774 = vmatprep.mubr.bf16.mxu0 %v3615_v45 }
 0x152   : > { %1775 = vmatmul.mubr.bf16.gmra.mrb[8].mxu0 %v3338_v49 }
 0x153   : > { %1784 = vmatprep.mubr.bf16.mxu0 %v3615_v45 }
 0x15a   : > { %1785 = vmatmul.mubr.bf16.gmra.mrb[12].mxu0 %v3342_v50 }
 0x15b   : > { %1794 = vmatprep.mubr.bf16.mxu0 %v3615_v45 }
 0x162   : > { %1795 = vmatmul.mubr.bf16.gmra.mrb[16].mxu0 %v3346_v51 }
 0x163   : > { %1804 = vmatprep.mubr.bf16.mxu0 %v3615_v45 }
 0x16a   : > { %1805 = vmatmul.mubr.bf16.gmra.mrb[20].mxu0 %v3350_v52 }
 0x16b   : > { %1814 = vmatprep.mubr.bf16.mxu0 %v3615_v45 }
 0x172   : > { %1815 = vmatmul.mubr.bf16.gmra.mrb[24].mxu0 %v3354_v53 }
 0x173   : > { %1824 = vmatprep.mubr.bf16.mxu0 %v3615_v45 }
 0x17a   : > { %1825 = vmatmul.mubr.bf16.gmra.mrb[28].mxu0 %v3358_v54 }
 0x1a0   : > { %v1417_v57 = vpop.f32.mrb[0].mxu1 }
 0x1a1   : > { %v1419_v58 = vpop.f32.mrb[1].mxu1  ;;  %v1418_v33 = vadd.f32 %v1417_v57, %v3950_v31  ;;  %v3376_v57 = vld [vmem:[#allocation7 + $0x8] sm:$0xff]  }
 0x1a2   : > { %v1421_v59 = vpop.f32.mrb[2].mxu1  ;;  %v1420_v34 = vadd.f32 %v1419_v58, %v3952_v32 }
 0x1a3   : > { %v1423_v60 = vpop.f32.mrb[3].mxu1  ;;  %v1422_v36 = vadd.f32 %v1421_v59, %v3950_v31 }
 0x1a4   : > { %v1424_v39 = vadd.f32 %v1423_v60, %v3952_v32 }
 0x1a8   : > { %v1427_v61 = vpop.f32.mrb[4].mxu1 }
 0x1a9   : > { %v1429_v62 = vpop.f32.mrb[5].mxu1  ;;  %v1428_v47 = vadd.f32 %v1427_v61, %v3950_v31 }
 0x1aa   : > { %v1431_v63 = vpop.f32.mrb[6].mxu1  ;;  %v1430_v50 = vadd.f32 %v1429_v62, %v3952_v32 }
 0x1ab   : > { %v1433_v0 = vpop.f32.mrb[7].mxu1  ;;  %v1432_v54 = vadd.f32 %v1431_v63, %v3950_v31  ;;  %v3377_v63 = vld [vmem:[#allocation7 + $0x10] sm:$0xff]  }
 0x1ac   : > { %v1434_v58 = vadd.f32 %v1433_v0, %v3952_v32 }
 0x1b0   : > { %v3898_v2 = vpop.f32.mrb[8].mxu1 }
 0x1b1   : > { %v3901_v3 = vpop.f32.mrb[9].mxu1  ;;  %v1438_v29 = vadd.f32 %v3898_v2, %v3950_v31 }
 0x1b2   : > { %v3903_v4 = vpop.f32.mrb[10].mxu1  ;;  %v1440_v0 = vadd.f32 %v3901_v3, %v3952_v32 }
 0x1b3   : > { %v3905_v5 = vpop.f32.mrb[11].mxu1 }
 0x1b4   : > { %v1444_v2 = vadd.f32 %v3905_v5, %v3952_v32 }
 0x1b8   : > { %v3907_v6 = vpop.f32.mrb[12].mxu1 }
 0x1b9   : > { %v3909_v7 = vpop.f32.mrb[13].mxu1 }
 0x1ba   : > { %v3911_v8 = vpop.f32.mrb[14].mxu1 }
 0x1bb   : > { %v3913_v9 = vpop.f32.mrb[15].mxu1 }
 0x1c0   : > { %v3915_v10 = vpop.f32.mrb[16].mxu1 }
 0x1c1   : > { %v3917_v11 = vpop.f32.mrb[17].mxu1 }
 0x1c2   : > { %v3919_v12 = vpop.f32.mrb[18].mxu1 }
 0x1c3   : > { %v3921_v13 = vpop.f32.mrb[19].mxu1 }
 0x1c8   : > { %v3923_v14 = vpop.f32.mrb[20].mxu1 }
 0x1c9   : > { %v3925_v15 = vpop.f32.mrb[21].mxu1 }
 0x1ca   : > { %v3927_v16 = vpop.f32.mrb[22].mxu1 }
 0x1cb   : > { %v3929_v17 = vpop.f32.mrb[23].mxu1 }
 0x1d0   : > { %v3931_v18 = vpop.f32.mrb[24].mxu1 }
 0x1d1   : > { %v3933_v19 = vpop.f32.mrb[25].mxu1 }
 0x1d2   : > { %v3935_v20 = vpop.f32.mrb[26].mxu1 }
 0x1d3   : > { %v3937_v21 = vpop.f32.mrb[27].mxu1 }
 0x1d8   : > { %v3939_v23 = vpop.f32.mrb[28].mxu1 }
 0x1d9   : > { %v3941_v24 = vpop.f32.mrb[29].mxu1 }
 0x1da   : > { %v3943_v25 = vpop.f32.mrb[30].mxu1 }
 0x1db   : > { %v3945_v26 = vpop.f32.mrb[31].mxu1 }
 0x215   : > { %v1756_v35 = vpop.f32.mrb[0].mxu0 }
 0x216   : > { %v2904_v37 = vadd.f32 %v1756_v35, %v1418_v33  ;;  %v1758_v38 = vpop.f32.mrb[1].mxu0 }
 0x217   : > { %v2906_v40 = vadd.f32 %v1758_v38, %v1420_v34  ;;  %v1760_v41 = vpop.f32.mrb[2].mxu0 }
 0x218   : > { %v2908_v42 = vadd.f32 %v1760_v41, %v1422_v36  ;;  %v1762_v43 = vpop.f32.mrb[3].mxu0  ;;  %v1835_v45 = vmax.f32 %v2904_v37, 0.0  ;;  %v1442_v37 = vadd.f32 %v3903_v4, %v3950_v31 }
 0x219   : > { %v2910_v44 = vadd.f32 %v1762_v43, %v1424_v39  ;;  %v1836_v48 = vmax.f32 %v2906_v40, 0.0 }
 0x21a   : > { %v1837_v46 = vmax.f32 %v2908_v42, 0.0 }
 0x21b   : > { %v1838_v49 = vmax.f32 %v2910_v44, 0.0 }
 0x21c   : > { %v1867_v51 = vpack.c.bf16 %v1837_v46, %v1835_v45  ;;  %v1448_v45 = vadd.f32 %v3907_v6, %v3950_v31 }
 0x21d   : > { %v1868_v52 = vpack.c.bf16 %v1838_v49, %v1836_v48  ;;  %v1766_v53 = vpop.f32.mrb[4].mxu0 }
 0x21e   : > { %v2912_v55 = vadd.f32 %v1766_v53, %v1428_v47  ;;  %v1768_v56 = vpop.f32.mrb[5].mxu0  ;;  %v1450_v47 = vadd.f32 %v3909_v7, %v3952_v32  ;;  %v1454_v53 = vadd.f32 %v3913_v9, %v3952_v32 }
 0x21f   : > { %v2914_v59 = vadd.f32 %v1768_v56, %v1430_v50  ;;  %v1770_v60 = vpop.f32.mrb[6].mxu0  ;;  %2050 = vmatprep.mubr.bf16.mxu1 %v1868_v52  ;;  %v1452_v50 = vadd.f32 %v3911_v8, %v3950_v31  ;;  %v1460_v8 = vadd.f32 %v3917_v11, %v3952_v32 }
 0x220   : > { %v2916_v22 = vadd.f32 %v1770_v60, %v1432_v54  ;;  %v1772_v27 = vpop.f32.mrb[7].mxu0  ;;  %2051 = vmatmul.mubr.bf16.vlgmr.msra.gmra.mrb[32].mxu1 %v1867_v51  ;;  %v1839_v62 = vmax.f32 %v2912_v55, 0.0 }
 0x221   : > { %v2918_v61 = vadd.f32 %v1772_v27, %v1434_v58  ;;  %2872 = vmatpush3.bf16.msra.mxu1 %v3896_v1  ;;  %v1840_v30 = vmax.f32 %v2914_v59, 0.0  ;;  %v1458_v59 = vadd.f32 %v3915_v10, %v3950_v31 }
 0x222   : > { %v1841_v28 = vmax.f32 %v2916_v22, 0.0  ;;  %2873 = vmatprep.subr.bf16.mxu1 %v3376_v57 }
 0x223   : > { %v1842_v33 = vmax.f32 %v2918_v61, 0.0 }
 0x224   : > { %v1869_v34 = vpack.c.bf16 %v1841_v28, %v1839_v62  ;;  %v1462_v62 = vadd.f32 %v3919_v12, %v3950_v31  ;;  %v1470_v12 = vadd.f32 %v3925_v15, %v3952_v32 }
 0x225   : > { %v1870_v35 = vpack.c.bf16 %v1842_v33, %v1840_v30  ;;  %v1776_v36 = vpop.f32.mrb[8].mxu0  ;;  %2874 = vmatpush3.bf16.msra.mxu1 %v3376_v57 }
 0x226   : > { %v2920_v1 = vadd.f32 %v1776_v36, %v1438_v29  ;;  %v1778_v38 = vpop.f32.mrb[9].mxu0  ;;  %2875 = vmatprep.subr.bf16.mxu1 %v3377_v63  ;;  %v1468_v36 = vadd.f32 %v3923_v14, %v3950_v31 }
 0x227   : > { %v2922_v39 = vadd.f32 %v1778_v38, %v1440_v0  ;;  %v1780_v40 = vpop.f32.mrb[10].mxu0  ;;  %2058 = vmatprep.mubr.bf16.mxu1 %v1870_v35 }
 0x228   : > { %v2924_v41 = vadd.f32 %v1780_v40, %v1442_v37  ;;  %v1782_v42 = vpop.f32.mrb[11].mxu0  ;;  %2059 = vmatmul.mubr.bf16.gmra.mrb[36].mxu1 %v1869_v34  ;;  %v1843_v43 = vmax.f32 %v2920_v1, 0.0 }
 0x229   : > { %v2926_v3 = vadd.f32 %v1782_v42, %v1444_v2  ;;  %2876 = vmatpush3.bf16.msra.mxu1 %v3377_v63  ;;  %v1844_v4 = vmax.f32 %v2922_v39, 0.0  ;;  %v1464_v63 = vadd.f32 %v3921_v13, %v3952_v32  ;;  %v1472_v39 = vadd.f32 %v3927_v16, %v3950_v31 }
 0x22a   : > { %v1845_v44 = vmax.f32 %v2924_v41, 0.0  ;;  %v1474_v42 = vadd.f32 %v3929_v17, %v3952_v32  ;;  %v1480_v16 = vadd.f32 %v3933_v19, %v3952_v32 }
 0x22b   : > { %v1846_v46 = vmax.f32 %v2926_v3, 0.0 }
 0x22c   : > { %v1871_v48 = vpack.c.bf16 %v1845_v44, %v1843_v43 }
 0x22d   : > { %v1872_v5 = vpack.c.bf16 %v1846_v46, %v1844_v4  ;;  %v1786_v49 = vpop.f32.mrb[12].mxu0  ;;  %v1478_v46 = vadd.f32 %v3931_v18, %v3950_v31 }
 0x22e   : > { %v2928_v51 = vadd.f32 %v1786_v49, %v1448_v45  ;;  %v1788_v52 = vpop.f32.mrb[13].mxu0 }
 0x22f   : > { %v2930_v54 = vadd.f32 %v1788_v52, %v1450_v47  ;;  %v1790_v55 = vpop.f32.mrb[14].mxu0  ;;  %2066 = vmatprep.mubr.bf16.mxu1 %v1872_v5 }
 0x230   : > { %v2932_v6 = vadd.f32 %v1790_v55, %v1452_v50  ;;  %v1792_v56 = vpop.f32.mrb[15].mxu0  ;;  %2067 = vmatmul.mubr.bf16.gmra.mrb[40].mxu1 %v1871_v48  ;;  %v1847_v58 = vmax.f32 %v2928_v51, 0.0  ;;  %v1482_v50 = vadd.f32 %v3935_v20, %v3950_v31  ;;  %v1490_v20 = vadd.f32 %v3941_v24, %v3952_v32 }
 0x231   : > { %v2934_v57 = vadd.f32 %v1792_v56, %v1454_v53  ;;  %v1848_v60 = vmax.f32 %v2930_v54, 0.0  ;;  %v1484_v53 = vadd.f32 %v3937_v21, %v3952_v32 }
 0x232   : > { %v1849_v7 = vmax.f32 %v2932_v6, 0.0 }
 0x233   : > { %v1850_v22 = vmax.f32 %v2934_v57, 0.0 }
 0x234   : > { %v1873_v27 = vpack.c.bf16 %v1849_v7, %v1847_v58  ;;  %v1488_v58 = vadd.f32 %v3939_v23, %v3950_v31 }
 0x235   : > { %v1874_v61 = vpack.c.bf16 %v1850_v22, %v1848_v60  ;;  %v1796_v9 = vpop.f32.mrb[16].mxu0 }
 0x236   : > { %v2936_v28 = vadd.f32 %v1796_v9, %v1458_v59  ;;  %v1798_v29 = vpop.f32.mrb[17].mxu0  ;;  %v1494_v9 = vadd.f32 %v3945_v26, %v3952_v32  ;;  %v3380_v26 = vld [vmem:[#allocation7 + $0x28] sm:$0xff]   ;;  %v3381_v32 = vld [vmem:[#allocation7 + $0x30] sm:$0xff]  }
 0x237   : > { %v2938_v30 = vadd.f32 %v1798_v29, %v1460_v8  ;;  %v1800_v33 = vpop.f32.mrb[18].mxu0  ;;  %2074 = vmatprep.mubr.bf16.mxu1 %v1874_v61  ;;  %v1492_v8 = vadd.f32 %v3943_v25, %v3950_v31  ;;  %v3378_v25 = vld [vmem:[#allocation7 + $0x18] sm:$0xff]   ;;  %v3379_v31 = vld [vmem:[#allocation7 + $0x20] sm:$0xff]  }
 0x238   : > { %v2940_v10 = vadd.f32 %v1800_v33, %v1462_v62  ;;  %v1802_v0 = vpop.f32.mrb[19].mxu0  ;;  %2075 = vmatmul.mubr.bf16.gmra.mrb[44].mxu1 %v1873_v27  ;;  %v1851_v35 = vmax.f32 %v2936_v28, 0.0  ;;  %2877 = vmatprep.subr.bf16.mxu1 %v3378_v25 }
 0x239   : > { %v2942_v34 = vadd.f32 %v1802_v0, %v1464_v63  ;;  %v1852_v37 = vmax.f32 %v2938_v30, 0.0  ;;  %2878 = vmatpush3.bf16.msra.mxu1 %v3378_v25 }
 0x23a   : > { %v1853_v11 = vmax.f32 %v2940_v10, 0.0  ;;  %2879 = vmatprep.subr.bf16.mxu1 %v3379_v31 }
 0x23b   : > { %v1854_v1 = vmax.f32 %v2942_v34, 0.0 }
 0x23c   : > { %v1875_v38 = vpack.c.bf16 %v1853_v11, %v1851_v35  ;;  %v3382_v35 = vld [vmem:[#allocation7 + $0x38] sm:$0xff]  }
 0x23d   : > { %v1876_v2 = vpack.c.bf16 %v1854_v1, %v1852_v37  ;;  %v1806_v13 = vpop.f32.mrb[20].mxu0  ;;  %2880 = vmatpush3.bf16.msra.mxu1 %v3379_v31 }
 0x23e   : > { %v2944_v40 = vadd.f32 %v1806_v13, %v1468_v36  ;;  %v1808_v41 = vpop.f32.mrb[21].mxu0  ;;  %2881 = vmatprep.subr.bf16.mxu1 %v3380_v26  ;;  %v4014_v36 = vld [vmem:[%s4171_s4] ss:$0 sm:$0xff] }
 0x23f   : > { %v2946_v3 = vadd.f32 %v1808_v41, %v1470_v12  ;;  %v1810_v43 = vpop.f32.mrb[22].mxu0  ;;  %2082 = vmatprep.mubr.bf16.mxu1 %v1876_v2 }
 0x240   : > { %v2948_v14 = vadd.f32 %v1810_v43, %v1472_v39  ;;  %v1812_v44 = vpop.f32.mrb[23].mxu0  ;;  %2083 = vmatmul.mubr.bf16.gmra.mrb[48].mxu1 %v1875_v38  ;;  %v1855_v4 = vmax.f32 %v2944_v40, 0.0 }
 0x241   : > { %v2950_v45 = vadd.f32 %v1812_v44, %v1474_v42  ;;  %v1856_v47 = vmax.f32 %v2946_v3, 0.0  ;;  %2882 = vmatpush3.bf16.msra.mxu1 %v3380_v26 }
 0x242   : > { %v1857_v15 = vmax.f32 %v2948_v14, 0.0  ;;  %2883 = vmatprep.subr.bf16.mxu1 %v3381_v32 }
 0x243   : > { %v1858_v48 = vmax.f32 %v2950_v45, 0.0 }
 0x244   : > { %v1877_v5 = vpack.c.bf16 %v1857_v15, %v1855_v4 }
 0x245   : > { %v1878_v49 = vpack.c.bf16 %v1858_v48, %v1856_v47  ;;  %v1816_v17 = vpop.f32.mrb[24].mxu0  ;;  %2884 = vmatpush3.bf16.msra.mxu1 %v3381_v32 }
 0x246   : > { %v2952_v51 = vadd.f32 %v1816_v17, %v1478_v46  ;;  %v1818_v52 = vpop.f32.mrb[25].mxu0  ;;  %2885 = vmatprep.subr.bf16.mxu1 %v3382_v35 }
 0x247   : > { %v2954_v54 = vadd.f32 %v1818_v52, %v1480_v16  ;;  %v1820_v55 = vpop.f32.mrb[26].mxu0  ;;  %2090 = vmatprep.mubr.bf16.mxu1 %v1878_v49 }
 0x248   : > { %v2956_v18 = vadd.f32 %v1820_v55, %v1482_v50  ;;  %v1822_v6 = vpop.f32.mrb[27].mxu0  ;;  %2091 = vmatmul.mubr.bf16.gmra.mrb[52].mxu1 %v1877_v5  ;;  %v1859_v57 = vmax.f32 %v2952_v51, 0.0 }
 0x249   : > { %v2958_v56 = vadd.f32 %v1822_v6, %v1484_v53  ;;  %v1860_v7 = vmax.f32 %v2954_v54, 0.0  ;;  %2886 = vmatpush3.bf16.msra.mxu1 %v3382_v35 }
 0x24a   : > { %v1861_v19 = vmax.f32 %v2956_v18, 0.0 }
 0x24b   : > { %v1862_v59 = vmax.f32 %v2958_v56, 0.0 }
 0x24c   : > { %v1879_v60 = vpack.c.bf16 %v1861_v19, %v1859_v57 }
 0x24d   : > { %v1880_v22 = vpack.c.bf16 %v1862_v59, %v1860_v7  ;;  %v1826_v21 = vpop.f32.mrb[28].mxu0 }
 0x24e   : > { %v2960_v27 = vadd.f32 %v1826_v21, %v1488_v58  ;;  %v1828_v61 = vpop.f32.mrb[29].mxu0 }
 0x24f   : > { %v2962_v62 = vadd.f32 %v1828_v61, %v1490_v20  ;;  %v1830_v28 = vpop.f32.mrb[30].mxu0  ;;  %2098 = vmatprep.mubr.bf16.mxu1 %v1880_v22 }
 0x250   : > { %v2964_v23 = vadd.f32 %v1830_v28, %v1492_v8  ;;  %v1832_v29 = vpop.f32.mrb[31].mxu0  ;;  %2099 = vmatmul.mubr.bf16.gmra.mrb[56].mxu1 %v1879_v60  ;;  %v1863_v30 = vmax.f32 %v2960_v27, 0.0 }
 0x251   : > { %v2966_v63 = vadd.f32 %v1832_v29, %v1494_v9  ;;  %v1864_v33 = vmax.f32 %v2962_v62, 0.0 }
 0x252   : > { %v1865_v24 = vmax.f32 %v2964_v23, 0.0 }
 0x253   : > { %v1866_v10 = vmax.f32 %v2966_v63, 0.0 }
 0x254   : > { %v1881_v0 = vpack.c.bf16 %v1865_v24, %v1863_v30 }
 0x255   : > { %v1882_v34 = vpack.c.bf16 %v1866_v10, %v1864_v33 }
 0x257   : > { %2106 = vmatprep.mubr.bf16.mxu1 %v1882_v34 }
 0x258   : > { %2107 = vmatmul.mubr.bf16.gmra.mrb[60].mxu1 %v1881_v0 }
 0x2f3   : > { %v2807_v11 = vpop.f32.mrb[32].mxu1 }
 0x2f4   : > { %v2808_v37 = vpop.f32.mrb[33].mxu1 }
 0x2f5   : > { %v2809_v1 = vadd.f32 %v2808_v37, %v2807_v11  ;;  %v2810_v12 = vpop.f32.mrb[34].mxu1 }
 0x2f6   : > { %v2811_v38 = vpop.f32.mrb[35].mxu1 }
 0x2f7   : > { %v2053_v2 = vadd.f32 %v2809_v1, %v4014_v36  ;;  %v2812_v13 = vadd.f32 %v2811_v38, %v2810_v12 }
 0x2f9   : > { %v2056_v39 = vadd.f32 %v2812_v13, %v4014_v36  ;;  %v2115_v40 = vmax.f32 %v2053_v2, 0.0 }
 0x2fb   : > { %v2116_v41 = vmax.f32 %v2056_v39, 0.0  ;;  %v2813_v42 = vpop.f32.mrb[36].mxu1 }
 0x2fc   : > { %v2814_v3 = vpop.f32.mrb[37].mxu1 }
 0x2fd   : > { %v2815_v43 = vadd.f32 %v2814_v3, %v2813_v42  ;;  %v2816_v14 = vpop.f32.mrb[38].mxu1  ;;  %v2131_v44 = vpack.c.bf16 %v2116_v41, %v2115_v40 }
 0x2fe   : > { %v2817_v45 = vpop.f32.mrb[39].mxu1 }
 0x2ff   : > { %v2061_v4 = vadd.f32 %v2815_v43, %v4014_v36  ;;  %v2818_v15 = vadd.f32 %v2817_v45, %v2816_v14  ;;  %2887 = vmatprep.mubr.bf16.mxu1 %v2131_v44 }
 0x301   : > { %v2064_v46 = vadd.f32 %v2818_v15, %v4014_v36  ;;  %v2117_v47 = vmax.f32 %v2061_v4, 0.0 }
 0x303   : > { %v2118_v48 = vmax.f32 %v2064_v46, 0.0  ;;  %v2819_v16 = vpop.f32.mrb[40].mxu1 }
 0x304   : > { %v2820_v5 = vpop.f32.mrb[41].mxu1 }
 0x305   : > { %v2132_v49 = vpack.c.bf16 %v2118_v48, %v2117_v47  ;;  %v2821_v17 = vadd.f32 %v2820_v5, %v2819_v16  ;;  %v2822_v50 = vpop.f32.mrb[42].mxu1 }
 0x306   : > { %v2823_v51 = vpop.f32.mrb[43].mxu1 }
 0x307   : > { %v2069_v52 = vadd.f32 %v2821_v17, %v4014_v36  ;;  %v2824_v53 = vadd.f32 %v2823_v51, %v2822_v50  ;;  %2888 = vmatmul.mubr.bf16.vlgmr.msra.gmra.mrb[64].mxu1 %v2132_v49  ;;  %v2780_v50 = vld [vmem:[%s4173_s6] ss:$0 sm:$0xff] }
 0x309   : > { %v2072_v54 = vadd.f32 %v2824_v53, %v4014_v36  ;;  %v2119_v55 = vmax.f32 %v2069_v52, 0.0 }
 0x30b   : > { %v2120_v18 = vmax.f32 %v2072_v54, 0.0  ;;  %v2825_v6 = vpop.f32.mrb[44].mxu1 }
 0x30c   : > { %v2826_v56 = vpop.f32.mrb[45].mxu1 }
 0x30d   : > { %v2827_v57 = vadd.f32 %v2826_v56, %v2825_v6  ;;  %v2828_v19 = vpop.f32.mrb[46].mxu1  ;;  %v2133_v58 = vpack.c.bf16 %v2120_v18, %v2119_v55 }
 0x30e   : > { %v2829_v7 = vpop.f32.mrb[47].mxu1 }
 0x30f   : > { %v2077_v59 = vadd.f32 %v2827_v57, %v4014_v36  ;;  %v2830_v20 = vadd.f32 %v2829_v7, %v2828_v19  ;;  %2891 = vmatprep.mubr.bf16.mxu1 %v2133_v58 }
 0x311   : > { %v2080_v60 = vadd.f32 %v2830_v20, %v4014_v36  ;;  %v2121_v22 = vmax.f32 %v2077_v59, 0.0 }
 0x313   : > { %v2122_v21 = vmax.f32 %v2080_v60, 0.0  ;;  %v2831_v8 = vpop.f32.mrb[48].mxu1 }
 0x314   : > { %v2832_v27 = vpop.f32.mrb[49].mxu1 }
 0x315   : > { %v2833_v61 = vadd.f32 %v2832_v27, %v2831_v8  ;;  %v2834_v9 = vpop.f32.mrb[50].mxu1  ;;  %v2134_v62 = vpack.c.bf16 %v2122_v21, %v2121_v22 }
 0x316   : > { %v2835_v28 = vpop.f32.mrb[51].mxu1 }
 0x317   : > { %v2085_v23 = vadd.f32 %v2833_v61, %v4014_v36  ;;  %v2836_v29 = vadd.f32 %v2835_v28, %v2834_v9  ;;  %2892 = vmatmul.mubr.bf16.gmra.mrb[68].mxu1 %v2134_v62 }
 0x319   : > { %v2088_v63 = vadd.f32 %v2836_v29, %v4014_v36  ;;  %v2123_v30 = vmax.f32 %v2085_v23, 0.0 }
 0x31b   : > { %v2124_v24 = vmax.f32 %v2088_v63, 0.0  ;;  %v2837_v33 = vpop.f32.mrb[52].mxu1 }
 0x31c   : > { %v2838_v10 = vpop.f32.mrb[53].mxu1 }
 0x31d   : > { %v2839_v0 = vadd.f32 %v2838_v10, %v2837_v33  ;;  %v2840_v34 = vpop.f32.mrb[54].mxu1  ;;  %v2135_v25 = vpack.c.bf16 %v2124_v24, %v2123_v30 }
 0x31e   : > { %v2841_v31 = vpop.f32.mrb[55].mxu1 }
 0x31f   : > { %v2093_v26 = vadd.f32 %v2839_v0, %v4014_v36  ;;  %v2842_v32 = vadd.f32 %v2841_v31, %v2840_v34  ;;  %2895 = vmatprep.mubr.bf16.mxu1 %v2135_v25 }
 0x321   : > { %v2096_v35 = vadd.f32 %v2842_v32, %v4014_v36  ;;  %v2125_v11 = vmax.f32 %v2093_v26, 0.0 }
 0x323   : > { %v2126_v37 = vmax.f32 %v2096_v35, 0.0  ;;  %v2843_v1 = vpop.f32.mrb[56].mxu1 }
 0x324   : > { %v2844_v12 = vpop.f32.mrb[57].mxu1 }
 0x325   : > { %v2845_v38 = vadd.f32 %v2844_v12, %v2843_v1  ;;  %v2846_v2 = vpop.f32.mrb[58].mxu1  ;;  %v2136_v13 = vpack.c.bf16 %v2126_v37, %v2125_v11 }
 0x326   : > { %v2847_v39 = vpop.f32.mrb[59].mxu1 }
 0x327   : > { %v2101_v40 = vadd.f32 %v2845_v38, %v4014_v36  ;;  %v2848_v41 = vadd.f32 %v2847_v39, %v2846_v2  ;;  %2896 = vmatmul.mubr.bf16.gmra.mrb[72].mxu1 %v2136_v13 }
 0x329   : > { %v2104_v42 = vadd.f32 %v2848_v41, %v4014_v36  ;;  %v2127_v3 = vmax.f32 %v2101_v40, 0.0 }
 0x32b   : > { %v2128_v43 = vmax.f32 %v2104_v42, 0.0  ;;  %v2849_v14 = vpop.f32.mrb[60].mxu1 }
 0x32c   : > { %v2850_v44 = vpop.f32.mrb[61].mxu1 }
 0x32d   : > { %v2851_v45 = vadd.f32 %v2850_v44, %v2849_v14  ;;  %v2852_v4 = vpop.f32.mrb[62].mxu1  ;;  %v2137_v15 = vpack.c.bf16 %v2128_v43, %v2127_v3 }
 0x32e   : > { %v2853_v46 = vpop.f32.mrb[63].mxu1 }
 0x32f   : > { %v2109_v47 = vadd.f32 %v2851_v45, %v4014_v36  ;;  %v2854_v48 = vadd.f32 %v2853_v46, %v2852_v4  ;;  %2899 = vmatprep.mubr.bf16.mxu1 %v2137_v15 }
 0x331   : > { %v2112_v16 = vadd.f32 %v2854_v48, %v4014_v36  ;;  %v2129_v5 = vmax.f32 %v2109_v47, 0.0 }
 0x333   : > { %v2130_v49 = vmax.f32 %v2112_v16, 0.0 }
 0x335   : > { %v2138_v17 = vpack.c.bf16 %v2130_v49, %v2129_v5 }
 0x337   : > { %2900 = vmatmul.mubr.bf16.gmra.mrb[76].mxu1 %v2138_v17 }
 0x3da   : > { %v2889_v51 = vpop.f32.mrb[64].mxu1 }
 0x3db   : > { %v2253_v52 = vadd.f32 %v2889_v51, %v2780_v50  ;;  %v2244_v53 = vpop.f32.mrb[65].mxu1 }
 0x3dc   : > { %v2245_v54 = vadd.f32 %v2780_v50, %v2244_v53  ;;  %v2890_v55 = vpop.f32.mrb[66].mxu1 }
 0x3dd   : > { %2311 = vmax.xlane.f32.xlu1 %v2253_v52  ;;  %v2247_v18 = vpop.f32.mrb[67].mxu1  ;;  %v2256_v6 = vadd.f32 %v2890_v55, %v2780_v50 }
 0x3de   : > { %2307 = vmax.xlane.f32.xlu0 %v2245_v54  ;;  %v2248_v56 = vadd.f32 %v2780_v50, %v2247_v18 }
 0x3e1   : > { %2313 = vmax.xlane.f32.xlu1 %v2256_v6 }
 0x3e2   : > { %2309 = vmax.xlane.f32.xlu0 %v2248_v56 }
 0x3ea   : > { %v2893_v36 = vpop.f32.mrb[68].mxu1 }
 0x3eb   : > { %v2269_v57 = vadd.f32 %v2893_v36, %v2780_v50  ;;  %v2260_v19 = vpop.f32.mrb[69].mxu1 }
 0x3ec   : > { %v2894_v58 = vpop.f32.mrb[70].mxu1  ;;  %v2261_v20 = vadd.f32 %v2780_v50, %v2260_v19 }
 0x3ed   : > { %v2272_v7 = vadd.f32 %v2894_v58, %v2780_v50  ;;  %v2263_v59 = vpop.f32.mrb[71].mxu1  ;;  %2319 = vmax.xlane.f32.xlu0 %v2269_v57 }
 0x3ee   : > { %v2264_v60 = vadd.f32 %v2780_v50, %v2263_v59 }
 0x3ef   : > { %2321 = vmax.xlane.f32.xlu1 %v2272_v7 }
 0x3f1   : > { %2315 = vmax.xlane.f32.xlu0 %v2261_v20 }
 0x3f3   : > { %2317 = vmax.xlane.f32.xlu1 %v2264_v60 }
 0x3fa   : > { %v2897_v22 = vpop.f32.mrb[72].mxu1 }
 0x3fb   : > { %v4035_v21 = vadd.f32 %v2897_v22, %v2780_v50  ;;  %v2276_v8 = vpop.f32.mrb[73].mxu1 }
 0x3fc   : > { %v2898_v27 = vpop.f32.mrb[74].mxu1  ;;  %v4040_v62 = vadd.f32 %v2780_v50, %v2276_v8 }
 0x3fd   : > { %v4037_v61 = vadd.f32 %v2898_v27, %v2780_v50  ;;  %v2279_v9 = vpop.f32.mrb[75].mxu1  ;;  %2327 = vmax.xlane.f32.xlu0 %v4035_v21 }
 0x3fe   : > { %v4043_v28 = vadd.f32 %v2780_v50, %v2279_v9 }
 0x3ff   : > { %2329 = vmax.xlane.f32.xlu1 %v4037_v61 }
 0x401   : > { %2323 = vmax.xlane.f32.xlu0 %v4040_v62 }
 0x403   : > { %2325 = vmax.xlane.f32.xlu1 %v4043_v28 }
 0x40a   : > { %v2901_v23 = vpop.f32.mrb[76].mxu1 }
 0x40b   : > { %v2292_v29 = vpop.f32.mrb[77].mxu1  ;;  %v4052_v10 = vadd.f32 %v2901_v23, %v2780_v50 }
 0x40c   : > { %v4047_v63 = vadd.f32 %v2780_v50, %v2292_v29  ;;  %v2902_v30 = vpop.f32.mrb[78].mxu1 }
 0x40d   : > { %v2295_v24 = vpop.f32.mrb[79].mxu1  ;;  %v4055_v0 = vadd.f32 %v2902_v30, %v2780_v50 }
 0x40e   : > { %v4049_v33 = vadd.f32 %v2780_v50, %v2295_v24  ;;  %2331 = vmax.xlane.f32.xlu0 %v4047_v63 }
 0x410   : > { %2333 = vmax.xlane.f32.xlu1 %v4049_v33 }
 0x412   : > { %2335 = vmax.xlane.f32.xlu0 %v4052_v10 }
 0x414   : > { %2337 = vmax.xlane.f32.xlu1 %v4055_v0 }
 0x46a   : > { %v2312_v34 = vpop.xlane.xlu1 %2311 }
 0x46b   : > { %v4059_v25 = vsub.f32 %v2253_v52, %v2312_v34  ;;  %v2308_v31 = vpop.xlane.xlu0 %2307 }
 0x46c   : > { %v4061_v26 = vsub.f32 %v2245_v54, %v2308_v31 }
 0x46d   : > { %v2359_v32 = vmul.f32 1.442695, %v4059_v25 }
 0x46e   : > { %v2355_v35 = vmul.f32 1.442695, %v4061_v26  ;;  %v2314_v11 = vpop.xlane.xlu1 %2313 }
 0x46f   : > { %3383 = vpow2.f32 %v2359_v32  ;;  %v4065_v37 = vsub.f32 %v2256_v6, %v2314_v11  ;;  %v2310_v1 = vpop.xlane.xlu0 %2309 }
 0x470   : > { %v4067_v12 = vsub.f32 %v2248_v56, %v2310_v1  ;;  %3385 = vpow2.f32 %v2355_v35 }
 0x471   : > { %v2361_v38 = vmul.f32 1.442695, %v4065_v37 }
 0x472   : > { %v2357_v2 = vmul.f32 1.442695, %v4067_v12 }
 0x473   : > { %3387 = vpow2.f32 %v2361_v38 }
 0x474   : > { %3389 = vpow2.f32 %v2357_v2 }
 0x479   : > { %v3384_v13 = vpop.eup %3383 }
 0x47a   : > { %2391 = vadd.xlane.f32.xlu0 %v3384_v13  ;;  %v2320_v39 = vpop.xlane.xlu0 %2319  ;;  %v3386_v41 = vpop.eup %3385 }
 0x47b   : > { %v4071_v40 = vsub.f32 %v2269_v57, %v2320_v39 }
 0x47c   : > { %v2322_v42 = vpop.xlane.xlu1 %2321 }
 0x47d   : > { %v3388_v3 = vpop.eup %3387  ;;  %v2367_v43 = vmul.f32 1.442695, %v4071_v40  ;;  %v4074_v14 = vsub.f32 %v2272_v7, %v2322_v42 }
 0x47e   : > { %2393 = vadd.xlane.f32.xlu1 %v3388_v3  ;;  %2387 = vadd.xlane.f32.xlu0 %v3386_v41  ;;  %v2316_v44 = vpop.xlane.xlu0 %2315  ;;  %v3390_v46 = vpop.eup %3389 }
 0x47f   : > { %3391 = vpow2.f32 %v2367_v43  ;;  %v2369_v45 = vmul.f32 1.442695, %v4074_v14  ;;  %v4077_v4 = vsub.f32 %v2261_v20, %v2316_v44 }
 0x480   : > { %v2318_v15 = vpop.xlane.xlu1 %2317 }
 0x481   : > { %3393 = vpow2.f32 %v2369_v45  ;;  %v2363_v47 = vmul.f32 1.442695, %v4077_v4  ;;  %v4080_v48 = vsub.f32 %v2264_v60, %v2318_v15 }
 0x482   : > { %2389 = vadd.xlane.f32.xlu1 %v3390_v46 }
 0x483   : > { %3395 = vpow2.f32 %v2363_v47  ;;  %v2365_v16 = vmul.f32 1.442695, %v4080_v48 }
 0x485   : > { %3397 = vpow2.f32 %v2365_v16 }
 0x489   : > { %v3392_v5 = vpop.eup %3391 }
 0x48a   : > { %2399 = vadd.xlane.f32.xlu0 %v3392_v5  ;;  %v2328_v49 = vpop.xlane.xlu0 %2327 }
 0x48b   : > { %v3394_v17 = vpop.eup %3393  ;;  %v4084_v50 = vsub.f32 %v4035_v21, %v2328_v49 }
 0x48c   : > { %v2330_v51 = vpop.xlane.xlu1 %2329  ;;  %2401 = vadd.xlane.f32.xlu1 %v3394_v17 }
 0x48d   : > { %v3396_v52 = vpop.eup %3395  ;;  %v2375_v53 = vmul.f32 1.442695, %v4084_v50  ;;  %v4088_v54 = vsub.f32 %v4037_v61, %v2330_v51 }
 0x48e   : > { %2395 = vadd.xlane.f32.xlu0 %v3396_v52  ;;  %v2324_v55 = vpop.xlane.xlu0 %2323 }
 0x48f   : > { %v3398_v18 = vpop.eup %3397  ;;  %3399 = vpow2.f32 %v2375_v53  ;;  %v2377_v6 = vmul.f32 1.442695, %v4088_v54  ;;  %v4092_v56 = vsub.f32 %v4040_v62, %v2324_v55 }
 0x490   : > { %v2326_v36 = vpop.xlane.xlu1 %2325  ;;  %2397 = vadd.xlane.f32.xlu1 %v3398_v18 }
 0x491   : > { %3401 = vpow2.f32 %v2377_v6  ;;  %v2371_v57 = vmul.f32 1.442695, %v4092_v56  ;;  %v4096_v19 = vsub.f32 %v4043_v28, %v2326_v36 }
 0x493   : > { %3403 = vpow2.f32 %v2371_v57  ;;  %v2373_v58 = vmul.f32 1.442695, %v4096_v19 }
 0x495   : > { %3405 = vpow2.f32 %v2373_v58 }
 0x499   : > { %v3400_v7 = vpop.eup %3399 }
 0x49a   : > { %2407 = vadd.xlane.f32.xlu0 %v3400_v7 }
 0x49b   : > { %v3402_v59 = vpop.eup %3401  ;;  %v2332_v20 = vpop.xlane.xlu0 %2331 }
 0x49c   : > { %v4100_v60 = vsub.f32 %v4047_v63, %v2332_v20  ;;  %2409 = vadd.xlane.f32.xlu1 %v3402_v59 }
 0x49d   : > { %v3404_v22 = vpop.eup %3403  ;;  %v2334_v21 = vpop.xlane.xlu1 %2333 }
 0x49e   : > { %v2379_v8 = vmul.f32 1.442695, %v4100_v60  ;;  %v4104_v27 = vsub.f32 %v4049_v33, %v2334_v21  ;;  %2403 = vadd.xlane.f32.xlu0 %v3404_v22 }
 0x49f   : > { %v3406_v61 = vpop.eup %3405  ;;  %v2336_v9 = vpop.xlane.xlu0 %2335 }
 0x4a0   : > { %3407 = vpow2.f32 %v2379_v8  ;;  %v2381_v62 = vmul.f32 1.442695, %v4104_v27  ;;  %v4108_v28 = vsub.f32 %v4052_v10, %v2336_v9  ;;  %2405 = vadd.xlane.f32.xlu1 %v3406_v61 }
 0x4a1   : > { %v2338_v23 = vpop.xlane.xlu1 %2337 }
 0x4a2   : > { %3409 = vpow2.f32 %v2381_v62  ;;  %v2383_v29 = vmul.f32 1.442695, %v4108_v28  ;;  %v4112_v63 = vsub.f32 %v4055_v0, %v2338_v23 }
 0x4a4   : > { %3411 = vpow2.f32 %v2383_v29  ;;  %v2385_v30 = vmul.f32 1.442695, %v4112_v63 }
 0x4a6   : > { %3413 = vpow2.f32 %v2385_v30 }
 0x4aa   : > { %v3408_v24 = vpop.eup %3407 }
 0x4ab   : > { %2411 = vadd.xlane.f32.xlu0 %v3408_v24 }
 0x4ac   : > { %v3410_v33 = vpop.eup %3409 }
 0x4ad   : > { %2413 = vadd.xlane.f32.xlu1 %v3410_v33 }
 0x4ae   : > { %v3412_v34 = vpop.eup %3411 }
 0x4af   : > { %2415 = vadd.xlane.f32.xlu0 %v3412_v34 }
 0x4b0   : > { %v3414_v10 = vpop.eup %3413 }
 0x4b1   : > { %2417 = vadd.xlane.f32.xlu1 %v3414_v10 }
 0x507   : > { %v2392_v31 = vpop.xlane.xlu0 %2391 }
 0x508   : > { %3415 = vlog2.f32 %v2392_v31 }
 0x50b   : > { %v2394_v32 = vpop.xlane.xlu1 %2393  ;;  %v2388_v0 = vpop.xlane.xlu0 %2387 }
 0x50c   : > { %3417 = vlog2.f32 %v2394_v32 }
 0x50d   : > { %3419 = vlog2.f32 %v2388_v0 }
 0x50f   : > { %v2390_v35 = vpop.xlane.xlu1 %2389 }
 0x510   : > { %3421 = vlog2.f32 %v2390_v35 }
 0x512   : > { %v3416_v11 = vpop.eup %3415 }
 0x513   : > { %v2424_v1 = vmul.f32 0.6931472, %v3416_v11 }
 0x515   : > { %v2453_v38 = vsub.f32 %v4059_v25, %v2424_v1 }
 0x516   : > { %v3418_v2 = vpop.eup %3417 }
 0x517   : > { %v3420_v13 = vpop.eup %3419  ;;  %2469 = vst [vmem:[%s4120_s21 + $0x10] sm:$0xff] %v2453_v38  ;;  %v2426_v39 = vmul.f32 0.6931472, %v3418_v2  ;;  %v2400_v41 = vpop.xlane.xlu0 %2399 }
 0x518   : > { %v2420_v42 = vmul.f32 0.6931472, %v3420_v13  ;;  %3423 = vlog2.f32 %v2400_v41 }
 0x519   : > { %v2454_v3 = vsub.f32 %v4065_v37, %v2426_v39  ;;  %v2402_v43 = vpop.xlane.xlu1 %2401 }
 0x51a   : > { %v3422_v44 = vpop.eup %3421  ;;  %v2451_v45 = vsub.f32 %v4061_v26, %v2420_v42  ;;  %3425 = vlog2.f32 %v2402_v43 }
 0x51b   : > { %2470 = vst [vmem:[%s4120_s21 + $0x18] sm:$0xff] %v2454_v3  ;;  %v2422_v15 = vmul.f32 0.6931472, %v3422_v44  ;;  %v2396_v25 = vpop.xlane.xlu0 %2395 }
 0x51c   : > { %2467 = vst [vmem:[%s4120_s21] sm:$0xff] %v2451_v45  ;;  %3427 = vlog2.f32 %v2396_v25 }
 0x51d   : > { %v2452_v46 = vsub.f32 %v4067_v12, %v2422_v15  ;;  %v2398_v47 = vpop.xlane.xlu1 %2397 }
 0x51e   : > { %3429 = vlog2.f32 %v2398_v47 }
 0x51f   : > { %2468 = vst [vmem:[%s4120_s21 + $0x8] sm:$0xff] %v2452_v46 }
 0x522   : > { %v3424_v16 = vpop.eup %3423 }
 0x523   : > { %v2432_v5 = vmul.f32 0.6931472, %v3424_v16 }
 0x524   : > { %v3426_v37 = vpop.eup %3425 }
 0x525   : > { %v2457_v49 = vsub.f32 %v4071_v40, %v2432_v5  ;;  %v2434_v26 = vmul.f32 0.6931472, %v3426_v37 }
 0x526   : > { %v3428_v17 = vpop.eup %3427 }
 0x527   : > { %2473 = vst [vmem:[%s4120_s21 + $0x30] sm:$0xff] %v2457_v49  ;;  %v2458_v51 = vsub.f32 %v4074_v14, %v2434_v26  ;;  %v2428_v52 = vmul.f32 0.6931472, %v3428_v17  ;;  %v2408_v53 = vpop.xlane.xlu0 %2407 }
 0x528   : > { %v3430_v55 = vpop.eup %3429  ;;  %3431 = vlog2.f32 %v2408_v53 }
 0x529   : > { %2474 = vst [vmem:[%s4120_s21 + $0x38] sm:$0xff] %v2458_v51  ;;  %v2455_v12 = vsub.f32 %v4077_v4, %v2428_v52  ;;  %v2430_v18 = vmul.f32 0.6931472, %v3430_v55  ;;  %v2410_v6 = vpop.xlane.xlu1 %2409 }
 0x52a   : > { %3433 = vlog2.f32 %v2410_v6 }
 0x52b   : > { %2471 = vst [vmem:[%s4120_s21 + $0x20] sm:$0xff] %v2455_v12  ;;  %v2456_v40 = vsub.f32 %v4080_v48, %v2430_v18  ;;  %v2404_v36 = vpop.xlane.xlu0 %2403 }
 0x52c   : > { %3435 = vlog2.f32 %v2404_v36 }
 0x52d   : > { %2472 = vst [vmem:[%s4120_s21 + $0x28] sm:$0xff] %v2456_v40  ;;  %v2406_v57 = vpop.xlane.xlu1 %2405 }
 0x52e   : > { %3437 = vlog2.f32 %v2406_v57 }
 0x532   : > { %v3432_v14 = vpop.eup %3431 }
 0x533   : > { %v2440_v58 = vmul.f32 0.6931472, %v3432_v14 }
 0x534   : > { %v3434_v7 = vpop.eup %3433 }
 0x535   : > { %v2461_v59 = vsub.f32 %v4084_v50, %v2440_v58  ;;  %v2442_v4 = vmul.f32 0.6931472, %v3434_v7 }
 0x536   : > { %v3436_v20 = vpop.eup %3435 }
 0x537   : > { %2477 = vst [vmem:[%s4120_s21 + $0x50] sm:$0xff] %v2461_v59  ;;  %v2462_v22 = vsub.f32 %v4088_v54, %v2442_v4  ;;  %v2436_v21 = vmul.f32 0.6931472, %v3436_v20 }
 0x538   : > { %v3438_v48 = vpop.eup %3437  ;;  %v2412_v8 = vpop.xlane.xlu0 %2411 }
 0x539   : > { %2478 = vst [vmem:[%s4120_s21 + $0x58] sm:$0xff] %v2462_v22  ;;  %v2459_v61 = vsub.f32 %v4092_v56, %v2436_v21  ;;  %v2438_v9 = vmul.f32 0.6931472, %v3438_v48  ;;  %3439 = vlog2.f32 %v2412_v8 }
 0x53a   : > { %v2414_v62 = vpop.xlane.xlu1 %2413 }
 0x53b   : > { %2475 = vst [vmem:[%s4120_s21 + $0x40] sm:$0xff] %v2459_v61  ;;  %v2460_v23 = vsub.f32 %v4096_v19, %v2438_v9  ;;  %3441 = vlog2.f32 %v2414_v62 }
 0x53c   : > { %v2416_v50 = vpop.xlane.xlu0 %2415 }
 0x53d   : > { %2476 = vst [vmem:[%s4120_s21 + $0x48] sm:$0xff] %v2460_v23  ;;  %3443 = vlog2.f32 %v2416_v50 }
 0x53e   : > { %v2418_v54 = vpop.xlane.xlu1 %2417 }
 0x53f   : > { %3445 = vlog2.f32 %v2418_v54 }
 0x543   : > { %v3440_v29 = vpop.eup %3439 }
 0x544   : > { %v2444_v30 = vmul.f32 0.6931472, %v3440_v29 }
 0x545   : > { %v3442_v24 = vpop.eup %3441 }
 0x546   : > { %v2463_v56 = vsub.f32 %v4100_v60, %v2444_v30  ;;  %v2446_v33 = vmul.f32 0.6931472, %v3442_v24 }
 0x547   : > { %v3444_v34 = vpop.eup %3443 }
 0x548   : > { %2479 = vst [vmem:[%s4120_s21 + $0x60] sm:$0xff] %v2463_v56  ;;  %v2464_v10 = vsub.f32 %v4104_v27, %v2446_v33  ;;  %v2448_v19 = vmul.f32 0.6931472, %v3444_v34 }
 0x549   : > { %v3446_v31 = vpop.eup %3445 }
 0x54a   : > { %2480 = vst [vmem:[%s4120_s21 + $0x68] sm:$0xff] %v2464_v10  ;;  %v2465_v32 = vsub.f32 %v4108_v28, %v2448_v19  ;;  %v2450_v0 = vmul.f32 0.6931472, %v3446_v31 }
 0x54c   : > { %2481 = vst [vmem:[%s4120_s21 + $0x70] sm:$0xff] %v2465_v32  ;;  %v2466_v35 = vsub.f32 %v4112_v63, %v2450_v0 }
 0x54e   : > { %2482 = vst [vmem:[%s4120_s21 + $0x78] sm:$0xff] %v2466_v35 }
 0x54f PF: > { %p19_p6 = scmp.ge.s32.totalorder %s3752_s15, 4   ;;  %s4190_s24 = smov %s3595_s25 }
 0x550   : > { %s4191_s25 = smov %s3599_s26  ;;  %s4192_s26 = smov %s3780_s11 }
 0x551   : > { %s4193_s27 = smov %s3752_s15  ;;  %21 = sbr.rel (!%p19_p6) target bundleno = 5 (0x5), region = 100 }
 0x558   :  { %2505 = vsyncpa [#allocation3], 1 }
 0x559   :  { %2507 = vsyncpa [#allocation3 + $0x1], 1 }
 0x55a   :  { %2508 = vsyncpa [#allocation5], 1 }
 0x55b   :  { %2509 = vsyncpa [#allocation8], 1 }

</bundles_post_ra>
